<compile_context>
chip_gen: v6e
topology: v6e:2x2x1
jax: 0.10.0
libtpu: 0.0.40
codegen_flags: <defaults>
</compile_context>

<pallas_src>
import jax
import jax.numpy as jnp
from jax import lax
from jax.experimental import pallas as pl
from jax.experimental.pallas import tpu as pltpu


def _round_up(n, m):
    return ((n + m - 1) // m) * m


def grui_recurrent_kernel(g_ref, w_rmu_ref, w_hh_ref, out_ref):
    """Serial GRU-I recurrence over one (Tc, TB, 4*Hp) chunk of gate inputs.

    g_ref    : (Tc, TB, 4*Hp) f32   [beta | r pre-act | mu pre-act | h_hat pre-act]
    w_rmu_ref: (Hp, 2*Hp)     bf16  fused hidden -> (r, mu) weight
    w_hh_ref : (Hp, Hp)       bf16  hidden -> h_hat weight (consumes r*h)
    out_ref  : (TB, Hp)       f32   resident hidden state / final output
    """
    hp = out_ref.shape[-1]
    tc = g_ref.shape[0]

    @pl.when(pl.program_id(1) == 0)
    def _():
        out_ref[...] = jnp.zeros_like(out_ref)

    h0 = out_ref[...]              # (TB, Hp) f32 carry
    w_rmu = w_rmu_ref[...]         # (Hp, 2Hp) bf16
    w_hh = w_hh_ref[...]           # (Hp, Hp)  bf16

    def step(i, h):
        g = g_ref[i]               # (TB, 4Hp) f32
        beta = g[:, 0 * hp:1 * hp]   # temporal decay, precomputed in wrapper
        g_r = g[:, 1 * hp:2 * hp]
        g_mu = g[:, 2 * hp:3 * hp]
        g_hh = g[:, 3 * hp:4 * hp]

        h = beta * h

        # fused r/mu gate matmul on the serial path (bf16 MXU, f32 accumulate)
        rm = jnp.dot(h.astype(jnp.bfloat16), w_rmu,
                     preferred_element_type=jnp.float32)    # (TB, 2Hp)
        r = jax.nn.sigmoid(rm[:, :hp] + g_r)
        mu = jax.nn.sigmoid(rm[:, hp:] + g_mu)

        hh_lin = jnp.dot((r * h).astype(jnp.bfloat16), w_hh,
                         preferred_element_type=jnp.float32) + g_hh
        h_hat = jnp.tanh(hh_lin)
        return h + mu * (h_hat - h)      # == (1 - mu) * h + mu * h_hat

    h = lax.fori_loop(0, tc, step, h0, unroll=True)
    out_ref[...] = h


def grui_encoder(x, delta, params, *, tc=8):
    """x, delta: (B, T, D) float32.  Returns final hidden state (B, H)."""
    B, T, D = x.shape
    H = params["btd"].shape[-1]

    hp = _round_up(H, 128)       # lane-dense hidden width
    b_pad = _round_up(B, 8)      # sublane-aligned batch
    t_pad = _round_up(T, tc)

    def pad2(w, rows, cols):
        return jnp.pad(w, ((0, rows - w.shape[0]), (0, cols - w.shape[1])))

    def pad1(b, n):
        return jnp.pad(jnp.reshape(b, (-1,)), (0, n - b.size))

    # ---- Phase 1 (fully parallel, one batched matmul in the wrapper):
    # gate pre-activations with biases folded in, produced directly time-major.
    w_x_all = jnp.zeros((2 * D, 4 * hp), jnp.float32)
    w_x_all = w_x_all.at[:D, 0 * hp:1 * hp].set(pad2(params["wtd"], D, hp))
    w_x_all = w_x_all.at[D:, 1 * hp:2 * hp].set(pad2(params["wr_x"], D, hp))
    w_x_all = w_x_all.at[D:, 2 * hp:3 * hp].set(pad2(params["wmu_x"], D, hp))
    w_x_all = w_x_all.at[D:, 3 * hp:4 * hp].set(pad2(params["wh_x"], D, hp))
    b_all = jnp.concatenate([pad1(params["btd"], hp), pad1(params["br"], hp),
                             pad1(params["bmu"], hp), pad1(params["bh"], hp)])

    x_p = jnp.pad(x, ((0, b_pad - B), (0, 0), (0, 0)))
    d_p = jnp.pad(delta, ((0, b_pad - B), (0, 0), (0, 0)))
    xin = jnp.concatenate([d_p, x_p], axis=-1)                 # (b_pad, T, 2D)
    gates = jnp.einsum("btf,fg->tbg", xin, w_x_all) + b_all    # (T, b_pad, 4hp)

    # TemporalDecay nonlinearity applied here (parallel phase), so the serial
    # kernel multiplies by a ready-made beta instead of running exp/relu.
    gates = gates.at[:, :, :hp].set(
        jnp.exp(-jnp.maximum(gates[:, :, :hp], 0.0)))

    if t_pad != T:
        # identity timesteps: beta = 1; mu pre-act -1e9 -> mu = 0 -> h unchanged
        pad_g = jnp.zeros((t_pad - T, b_pad, 4 * hp), jnp.float32)
        pad_g = pad_g.at[:, :, 0 * hp:1 * hp].set(1.0)
        pad_g = pad_g.at[:, :, 2 * hp:3 * hp].set(-1e9)
        gates = jnp.concatenate([gates, pad_g], axis=0)

    # ---- h-side weights: fused (r, mu) + separate h_hat, bf16 for the MXU.
    w_rmu_h = jnp.concatenate(
        [pad2(params["wr_h"], hp, hp), pad2(params["wmu_h"], hp, hp)],
        axis=1).astype(jnp.bfloat16)                            # (hp, 2hp)
    w_hh_h = pad2(params["wh_h"], hp, hp).astype(jnp.bfloat16)  # (hp, hp)

    # ---- Phase 2: serial recurrence in Pallas.
    tb = min(b_pad, 128)
    while b_pad % tb:
        tb -= 8
    grid = (b_pad // tb, t_pad // tc)

    out = pl.pallas_call(
        grui_recurrent_kernel,
        out_shape=jax.ShapeDtypeStruct((b_pad, hp), jnp.float32),
        grid_spec=pltpu.PrefetchScalarGridSpec(
            num_scalar_prefetch=0,
            grid=grid,
            in_specs=[
                # time-major gate chunks, pipelined along the time axis
                pl.BlockSpec((tc, tb, 4 * hp), lambda b, t: (t, b, 0)),
                # weights: whole-array, single-buffered, VMEM resident
                pl.BlockSpec(memory_space=pltpu.MemorySpace.VMEM),
                pl.BlockSpec(memory_space=pltpu.MemorySpace.VMEM),
            ],
            out_specs=pl.BlockSpec((tb, hp), lambda b, t: (b, 0)),
        ),
        compiler_params=pltpu.CompilerParams(
            dimension_semantics=("parallel", "arbitrary"),
            vmem_limit_bytes=32 * 1024 * 1024,
        ),
    )(gates, w_rmu_h, w_hh_h)

    return out[:B, :H]


def grui_encoder_ref(x, delta, params):
    """Pure-JAX f32 reference matching the PyTorch forward (eval mode)."""
    B, T, D = x.shape
    H = params["btd"].shape[-1]
    h = jnp.zeros((B, H), jnp.float32)
    for t in range(T):
        x_t = x[:, t, :]
        d_t = delta[:, t, :]
        beta = jnp.exp(-jnp.maximum(d_t @ params["wtd"] + params["btd"], 0.0))
        h = beta * h
        r = jax.nn.sigmoid(h @ params["wr_h"] + x_t @ params["wr_x"] + params["br"])
        mu = jax.nn.sigmoid(h @ params["wmu_h"] + x_t @ params["wmu_x"] + params["bmu"])
        h_hat = jnp.tanh((r * h) @ params["wh_h"] + x_t @ params["wh_x"] + params["bh"])
        h = (1.0 - mu) * h + mu * h_hat
    return h


def init_params(key, input_dim, hidden_dim):
    """Deterministic parameter init. Weights stored transposed: (in, out)."""
    D, H = input_dim, hidden_dim
    ks = jax.random.split(key, 8)
    scale = 0.1

    def w(k, shape):
        return scale * jax.random.normal(k, shape, jnp.float32)

    return {
        # TemporalDecay: Linear(D -> H)
        "wtd": w(ks[0], (D, H)),
        "btd": w(ks[1], (1, H)),
        # linear_r: Linear(H+D -> H), split into hidden / input parts
        "wr_h": w(ks[2], (H, H)),
        "wr_x": w(ks[2], (D, H)) * 0.5,
        "br": w(ks[3], (1, H)),
        # linear_mu
        "wmu_h": w(ks[4], (H, H)),
        "wmu_x": w(ks[4], (D, H)) * 0.5,
        "bmu": w(ks[5], (1, H)),
        # linear_h_hat
        "wh_h": w(ks[6], (H, H)),
        "wh_x": w(ks[6], (D, H)) * 0.5,
        "bh": w(ks[7], (1, H)),
    }


if __name__ == "__main__":
    key = jax.random.PRNGKey(0)
    # small shapes; also exercise batch padding (6 -> 8) and time padding (10 -> 16)
    B, T, D, H = 6, 10, 16, 32

    k_x, k_d, k_p = jax.random.split(key, 3)
    x = jax.random.normal(k_x, (B, T, D), jnp.float32)
    # delta is a non-negative time gap in the original model
    delta = jnp.abs(jax.random.normal(k_d, (B, T, D), jnp.float32))

    params = init_params(k_p, D, H)

    encoder = jax.jit(grui_encoder, static_argnames=("tc",))
    out = encoder(x, delta, params, tc=8)
    out = jax.block_until_ready(out)

    ref = grui_encoder_ref(x, delta, params)
    assert out.shape == (B, H)
    # h-side matmuls run in bf16 (f32 accumulation, f32 carry) -> tolerance is
    # looser than a pure-f32 kernel.
    err = jnp.max(jnp.abs(out - ref))
    assert err < 2e-2, f"max abs err {err}"

    print("KERNEL_OK")
</pallas_src>

<mosaic_0001>
module attributes {stable_mosaic.version = 11 : i64} {
  func.func @grui_recurrent_kernel(%arg0: i32, %arg1: i32, %arg2: memref<8x8x512xf32, #tpu.memory_space<vmem>>, %arg3: memref<128x256xbf16, #tpu.memory_space<vmem>>, %arg4: memref<128x128xbf16, #tpu.memory_space<vmem>>, %arg5: memref<8x128xf32, #tpu.memory_space<vmem>>) attributes {dimension_semantics = [#tpu.dimension_semantics<parallel>, #tpu.dimension_semantics<arbitrary>], iteration_bounds = array<i64: 1, 2>, scalar_prefetch = 0 : i64, scratch_operands = 0 : i64, tpu.core_type = #tpu.core_type<tc>, window_params = [{transform_indices = @transform_0, window_bounds = array<i64: 8, 8, 512>}, {pipeline_mode = #tpu.pipeline_mode<synchronous>, transform_indices = @transform_1, window_bounds = array<i64: 128, 256>}, {pipeline_mode = #tpu.pipeline_mode<synchronous>, transform_indices = @transform_2, window_bounds = array<i64: 128, 128>}, {transform_indices = @transform_3, window_bounds = array<i64: 8, 128>}]} {
    %c0_i32 = arith.constant 0 : i32
    %0 = arith.cmpi eq, %arg1, %c0_i32 : i32
    %1 = arith.extui %0 : i1 to i32
    %c0_i32_0 = arith.constant 0 : i32
    %2 = arith.cmpi ne, %1, %c0_i32_0 : i32
    scf.if %2 {
      %cst_56 = arith.constant 0.000000e+00 : f32
      %263 = vector.broadcast %cst_56 : f32 to vector<8x128xf32>
      %c0_57 = arith.constant 0 : index
      %c0_58 = arith.constant 0 : index
      %264 = vector.load %arg5[%c0_57, %c0_58] : memref<8x128xf32, #tpu.memory_space<vmem>>, vector<8x128xf32>
      tpu.vector_store %arg5[%c0_57, %c0_58], %263 {strides = array<i32>} : memref<8x128xf32, #tpu.memory_space<vmem>>, vector<8x128xf32>,
    } else {
    }
    %c0 = arith.constant 0 : index
    %c0_1 = arith.constant 0 : index
    %3 = vector.load %arg5[%c0, %c0_1] : memref<8x128xf32, #tpu.memory_space<vmem>>, vector<8x128xf32>
    %c0_2 = arith.constant 0 : index
    %c0_3 = arith.constant 0 : index
    %4 = vector.load %arg3[%c0_2, %c0_3] : memref<128x256xbf16, #tpu.memory_space<vmem>>, vector<128x256xbf16>
    %c0_4 = arith.constant 0 : index
    %c0_5 = arith.constant 0 : index
    %5 = vector.load %arg4[%c0_4, %c0_5] : memref<128x128xbf16, #tpu.memory_space<vmem>>, vector<128x128xbf16>
    %c0_i32_6 = arith.constant 0 : i32
    %6 = arith.index_cast %c0_i32_6 : i32 to index
    %c0_7 = arith.constant 0 : index
    %c0_8 = arith.constant 0 : index
    %7 = vector.load %arg2[%6, %c0_7, %c0_8] : memref<8x8x512xf32, #tpu.memory_space<vmem>>, vector<1x8x512xf32>
    %8 = vector.shape_cast %7 : vector<1x8x512xf32> to vector<8x512xf32>
    %9 = vector.extract_strided_slice %8 {offsets = [0, 0], sizes = [8, 128], strides = [1, 1]} : vector<8x512xf32> to vector<8x128xf32>
    %10 = vector.extract_strided_slice %8 {offsets = [0, 128], sizes = [8, 128], strides = [1, 1]} : vector<8x512xf32> to vector<8x128xf32>
    %11 = vector.extract_strided_slice %8 {offsets = [0, 256], sizes = [8, 128], strides = [1, 1]} : vector<8x512xf32> to vector<8x128xf32>
    %12 = vector.extract_strided_slice %8 {offsets = [0, 384], sizes = [8, 128], strides = [1, 1]} : vector<8x512xf32> to vector<8x128xf32>
    %13 = arith.mulf %9, %3 : vector<8x128xf32>
    %14 = arith.truncf %13 : vector<8x128xf32> to vector<8x128xbf16>
    %cst = arith.constant dense<0.000000e+00> : vector<8x256xf32>
    %15 = tpu.matmul %14, %4, %cst {dimension_numbers = #tpu.dot_dimension_numbers<[1], [0], [0], [1], [0, 0, 1, 1], [], []>} : vector<8x128xbf16>, vector<128x256xbf16>, vector<8x256xf32> -> vector<8x256xf32>
    %16 = vector.extract_strided_slice %15 {offsets = [0, 0], sizes = [8, 128], strides = [1, 1]} : vector<8x256xf32> to vector<8x128xf32>
    %17 = arith.addf %16, %10 : vector<8x128xf32>
    %18 = arith.negf %17 : vector<8x128xf32>
    %19 = math.exp %18 : vector<8x128xf32>
    %cst_9 = arith.constant 1.000000e+00 : f32
    %20 = vector.broadcast %cst_9 : f32 to vector<8x128xf32>
    %21 = arith.addf %20, %19 : vector<8x128xf32>
    %22 = arith.divf %20, %21 : vector<8x128xf32>
    %23 = vector.extract_strided_slice %15 {offsets = [0, 128], sizes = [8, 128], strides = [1, 1]} : vector<8x256xf32> to vector<8x128xf32>
    %24 = arith.addf %23, %11 : vector<8x128xf32>
    %25 = arith.negf %24 : vector<8x128xf32>
    %26 = math.exp %25 : vector<8x128xf32>
    %cst_10 = arith.constant 1.000000e+00 : f32
    %27 = vector.broadcast %cst_10 : f32 to vector<8x128xf32>
    %28 = arith.addf %27, %26 : vector<8x128xf32>
    %29 = arith.divf %27, %28 : vector<8x128xf32>
    %30 = arith.mulf %22, %13 : vector<8x128xf32>
    %31 = arith.truncf %30 : vector<8x128xf32> to vector<8x128xbf16>
    %cst_11 = arith.constant dense<0.000000e+00> : vector<8x128xf32>
    %32 = tpu.matmul %31, %5, %cst_11 {dimension_numbers = #tpu.dot_dimension_numbers<[1], [0], [0], [1], [0, 0, 1, 1], [], []>} : vector<8x128xbf16>, vector<128x128xbf16>, vector<8x128xf32> -> vector<8x128xf32>
    %33 = arith.addf %32, %12 : vector<8x128xf32>
    %34 = math.tanh %33 : vector<8x128xf32>
    %35 = arith.subf %34, %13 : vector<8x128xf32>
    %36 = arith.mulf %29, %35 : vector<8x128xf32>
    %37 = arith.addf %13, %36 : vector<8x128xf32>
    %c1_i32 = arith.constant 1 : i32
    %38 = arith.index_cast %c1_i32 : i32 to index
    %c0_12 = arith.constant 0 : index
    %c0_13 = arith.constant 0 : index
    %39 = vector.load %arg2[%38, %c0_12, %c0_13] : memref<8x8x512xf32, #tpu.memory_space<vmem>>, vector<1x8x512xf32>
    %40 = vector.shape_cast %39 : vector<1x8x512xf32> to vector<8x512xf32>
    %41 = vector.extract_strided_slice %40 {offsets = [0, 0], sizes = [8, 128], strides = [1, 1]} : vector<8x512xf32> to vector<8x128xf32>
    %42 = vector.extract_strided_slice %40 {offsets = [0, 128], sizes = [8, 128], strides = [1, 1]} : vector<8x512xf32> to vector<8x128xf32>
    %43 = vector.extract_strided_slice %40 {offsets = [0, 256], sizes = [8, 128], strides = [1, 1]} : vector<8x512xf32> to vector<8x128xf32>
    %44 = vector.extract_strided_slice %40 {offsets = [0, 384], sizes = [8, 128], strides = [1, 1]} : vector<8x512xf32> to vector<8x128xf32>
    %45 = arith.mulf %41, %37 : vector<8x128xf32>
    %46 = arith.truncf %45 : vector<8x128xf32> to vector<8x128xbf16>
    %cst_14 = arith.constant dense<0.000000e+00> : vector<8x256xf32>
    %47 = tpu.matmul %46, %4, %cst_14 {dimension_numbers = #tpu.dot_dimension_numbers<[1], [0], [0], [1], [0, 0, 1, 1], [], []>} : vector<8x128xbf16>, vector<128x256xbf16>, vector<8x256xf32> -> vector<8x256xf32>
    %48 = vector.extract_strided_slice %47 {offsets = [0, 0], sizes = [8, 128], strides = [1, 1]} : vector<8x256xf32> to vector<8x128xf32>
    %49 = arith.addf %48, %42 : vector<8x128xf32>
    %50 = arith.negf %49 : vector<8x128xf32>
    %51 = math.exp %50 : vector<8x128xf32>
    %cst_15 = arith.constant 1.000000e+00 : f32
    %52 = vector.broadcast %cst_15 : f32 to vector<8x128xf32>
    %53 = arith.addf %52, %51 : vector<8x128xf32>
    %54 = arith.divf %52, %53 : vector<8x128xf32>
    %55 = vector.extract_strided_slice %47 {offsets = [0, 128], sizes = [8, 128], strides = [1, 1]} : vector<8x256xf32> to vector<8x128xf32>
    %56 = arith.addf %55, %43 : vector<8x128xf32>
    %57 = arith.negf %56 : vector<8x128xf32>
    %58 = math.exp %57 : vector<8x128xf32>
    %cst_16 = arith.constant 1.000000e+00 : f32
    %59 = vector.broadcast %cst_16 : f32 to vector<8x128xf32>
    %60 = arith.addf %59, %58 : vector<8x128xf32>
    %61 = arith.divf %59, %60 : vector<8x128xf32>
    %62 = arith.mulf %54, %45 : vector<8x128xf32>
    %63 = arith.truncf %62 : vector<8x128xf32> to vector<8x128xbf16>
    %cst_17 = arith.constant dense<0.000000e+00> : vector<8x128xf32>
    %64 = tpu.matmul %63, %5, %cst_17 {dimension_numbers = #tpu.dot_dimension_numbers<[1], [0], [0], [1], [0, 0, 1, 1], [], []>} : vector<8x128xbf16>, vector<128x128xbf16>, vector<8x128xf32> -> vector<8x128xf32>
    %65 = arith.addf %64, %44 : vector<8x128xf32>
    %66 = math.tanh %65 : vector<8x128xf32>
    %67 = arith.subf %66, %45 : vector<8x128xf32>
    %68 = arith.mulf %61, %67 : vector<8x128xf32>
    %69 = arith.addf %45, %68 : vector<8x128xf32>
    %c2_i32 = arith.constant 2 : i32
    %70 = arith.index_cast %c2_i32 : i32 to index
    %c0_18 = arith.constant 0 : index
    %c0_19 = arith.constant 0 : index
    %71 = vector.load %arg2[%70, %c0_18, %c0_19] : memref<8x8x512xf32, #tpu.memory_space<vmem>>, vector<1x8x512xf32>
    %72 = vector.shape_cast %71 : vector<1x8x512xf32> to vector<8x512xf32>
    %73 = vector.extract_strided_slice %72 {offsets = [0, 0], sizes = [8, 128], strides = [1, 1]} : vector<8x512xf32> to vector<8x128xf32>
    %74 = vector.extract_strided_slice %72 {offsets = [0, 128], sizes = [8, 128], strides = [1, 1]} : vector<8x512xf32> to vector<8x128xf32>
    %75 = vector.extract_strided_slice %72 {offsets = [0, 256], sizes = [8, 128], strides = [1, 1]} : vector<8x512xf32> to vector<8x128xf32>
    %76 = vector.extract_strided_slice %72 {offsets = [0, 384], sizes = [8, 128], strides = [1, 1]} : vector<8x512xf32> to vector<8x128xf32>
    %77 = arith.mulf %73, %69 : vector<8x128xf32>
    %78 = arith.truncf %77 : vector<8x128xf32> to vector<8x128xbf16>
    %cst_20 = arith.constant dense<0.000000e+00> : vector<8x256xf32>
    %79 = tpu.matmul %78, %4, %cst_20 {dimension_numbers = #tpu.dot_dimension_numbers<[1], [0], [0], [1], [0, 0, 1, 1], [], []>} : vector<8x128xbf16>, vector<128x256xbf16>, vector<8x256xf32> -> vector<8x256xf32>
    %80 = vector.extract_strided_slice %79 {offsets = [0, 0], sizes = [8, 128], strides = [1, 1]} : vector<8x256xf32> to vector<8x128xf32>
    %81 = arith.addf %80, %74 : vector<8x128xf32>
    %82 = arith.negf %81 : vector<8x128xf32>
    %83 = math.exp %82 : vector<8x128xf32>
    %cst_21 = arith.constant 1.000000e+00 : f32
    %84 = vector.broadcast %cst_21 : f32 to vector<8x128xf32>
    %85 = arith.addf %84, %83 : vector<8x128xf32>
    %86 = arith.divf %84, %85 : vector<8x128xf32>
    %87 = vector.extract_strided_slice %79 {offsets = [0, 128], sizes = [8, 128], strides = [1, 1]} : vector<8x256xf32> to vector<8x128xf32>
    %88 = arith.addf %87, %75 : vector<8x128xf32>
    %89 = arith.negf %88 : vector<8x128xf32>
    %90 = math.exp %89 : vector<8x128xf32>
    %cst_22 = arith.constant 1.000000e+00 : f32
    %91 = vector.broadcast %cst_22 : f32 to vector<8x128xf32>
    %92 = arith.addf %91, %90 : vector<8x128xf32>
    %93 = arith.divf %91, %92 : vector<8x128xf32>
    %94 = arith.mulf %86, %77 : vector<8x128xf32>
    %95 = arith.truncf %94 : vector<8x128xf32> to vector<8x128xbf16>
    %cst_23 = arith.constant dense<0.000000e+00> : vector<8x128xf32>
    %96 = tpu.matmul %95, %5, %cst_23 {dimension_numbers = #tpu.dot_dimension_numbers<[1], [0], [0], [1], [0, 0, 1, 1], [], []>} : vector<8x128xbf16>, vector<128x128xbf16>, vector<8x128xf32> -> vector<8x128xf32>
    %97 = arith.addf %96, %76 : vector<8x128xf32>
    %98 = math.tanh %97 : vector<8x128xf32>
    %99 = arith.subf %98, %77 : vector<8x128xf32>
    %100 = arith.mulf %93, %99 : vector<8x128xf32>
    %101 = arith.addf %77, %100 : vector<8x128xf32>
    %c3_i32 = arith.constant 3 : i32
    %102 = arith.index_cast %c3_i32 : i32 to index
    %c0_24 = arith.constant 0 : index
    %c0_25 = arith.constant 0 : index
    %103 = vector.load %arg2[%102, %c0_24, %c0_25] : memref<8x8x512xf32, #tpu.memory_space<vmem>>, vector<1x8x512xf32>
    %104 = vector.shape_cast %103 : vector<1x8x512xf32> to vector<8x512xf32>
    %105 = vector.extract_strided_slice %104 {offsets = [0, 0], sizes = [8, 128], strides = [1, 1]} : vector<8x512xf32> to vector<8x128xf32>
    %106 = vector.extract_strided_slice %104 {offsets = [0, 128], sizes = [8, 128], strides = [1, 1]} : vector<8x512xf32> to vector<8x128xf32>
    %107 = vector.extract_strided_slice %104 {offsets = [0, 256], sizes = [8, 128], strides = [1, 1]} : vector<8x512xf32> to vector<8x128xf32>
    %108 = vector.extract_strided_slice %104 {offsets = [0, 384], sizes = [8, 128], strides = [1, 1]} : vector<8x512xf32> to vector<8x128xf32>
    %109 = arith.mulf %105, %101 : vector<8x128xf32>
    %110 = arith.truncf %109 : vector<8x128xf32> to vector<8x128xbf16>
    %cst_26 = arith.constant dense<0.000000e+00> : vector<8x256xf32>
    %111 = tpu.matmul %110, %4, %cst_26 {dimension_numbers = #tpu.dot_dimension_numbers<[1], [0], [0], [1], [0, 0, 1, 1], [], []>} : vector<8x128xbf16>, vector<128x256xbf16>, vector<8x256xf32> -> vector<8x256xf32>
    %112 = vector.extract_strided_slice %111 {offsets = [0, 0], sizes = [8, 128], strides = [1, 1]} : vector<8x256xf32> to vector<8x128xf32>
    %113 = arith.addf %112, %106 : vector<8x128xf32>
    %114 = arith.negf %113 : vector<8x128xf32>
    %115 = math.exp %114 : vector<8x128xf32>
    %cst_27 = arith.constant 1.000000e+00 : f32
    %116 = vector.broadcast %cst_27 : f32 to vector<8x128xf32>
    %117 = arith.addf %116, %115 : vector<8x128xf32>
    %118 = arith.divf %116, %117 : vector<8x128xf32>
    %119 = vector.extract_strided_slice %111 {offsets = [0, 128], sizes = [8, 128], strides = [1, 1]} : vector<8x256xf32> to vector<8x128xf32>
    %120 = arith.addf %119, %107 : vector<8x128xf32>
    %121 = arith.negf %120 : vector<8x128xf32>
    %122 = math.exp %121 : vector<8x128xf32>
    %cst_28 = arith.constant 1.000000e+00 : f32
    %123 = vector.broadcast %cst_28 : f32 to vector<8x128xf32>
    %124 = arith.addf %123, %122 : vector<8x128xf32>
    %125 = arith.divf %123, %124 : vector<8x128xf32>
    %126 = arith.mulf %118, %109 : vector<8x128xf32>
    %127 = arith.truncf %126 : vector<8x128xf32> to vector<8x128xbf16>
    %cst_29 = arith.constant dense<0.000000e+00> : vector<8x128xf32>
    %128 = tpu.matmul %127, %5, %cst_29 {dimension_numbers = #tpu.dot_dimension_numbers<[1], [0], [0], [1], [0, 0, 1, 1], [], []>} : vector<8x128xbf16>, vector<128x128xbf16>, vector<8x128xf32> -> vector<8x128xf32>
    %129 = arith.addf %128, %108 : vector<8x128xf32>
    %130 = math.tanh %129 : vector<8x128xf32>
    %131 = arith.subf %130, %109 : vector<8x128xf32>
    %132 = arith.mulf %125, %131 : vector<8x128xf32>
    %133 = arith.addf %109, %132 : vector<8x128xf32>
    %c4_i32 = arith.constant 4 : i32
    %134 = arith.index_cast %c4_i32 : i32 to index
    %c0_30 = arith.constant 0 : index
    %c0_31 = arith.constant 0 : index
    %135 = vector.load %arg2[%134, %c0_30, %c0_31] : memref<8x8x512xf32, #tpu.memory_space<vmem>>, vector<1x8x512xf32>
    %136 = vector.shape_cast %135 : vector<1x8x512xf32> to vector<8x512xf32>
    %137 = vector.extract_strided_slice %136 {offsets = [0, 0], sizes = [8, 128], strides = [1, 1]} : vector<8x512xf32> to vector<8x128xf32>
    %138 = vector.extract_strided_slice %136 {offsets = [0, 128], sizes = [8, 128], strides = [1, 1]} : vector<8x512xf32> to vector<8x128xf32>
    %139 = vector.extract_strided_slice %136 {offsets = [0, 256], sizes = [8, 128], strides = [1, 1]} : vector<8x512xf32> to vector<8x128xf32>
    %140 = vector.extract_strided_slice %136 {offsets = [0, 384], sizes = [8, 128], strides = [1, 1]} : vector<8x512xf32> to vector<8x128xf32>
    %141 = arith.mulf %137, %133 : vector<8x128xf32>
    %142 = arith.truncf %141 : vector<8x128xf32> to vector<8x128xbf16>
    %cst_32 = arith.constant dense<0.000000e+00> : vector<8x256xf32>
    %143 = tpu.matmul %142, %4, %cst_32 {dimension_numbers = #tpu.dot_dimension_numbers<[1], [0], [0], [1], [0, 0, 1, 1], [], []>} : vector<8x128xbf16>, vector<128x256xbf16>, vector<8x256xf32> -> vector<8x256xf32>
    %144 = vector.extract_strided_slice %143 {offsets = [0, 0], sizes = [8, 128], strides = [1, 1]} : vector<8x256xf32> to vector<8x128xf32>
    %145 = arith.addf %144, %138 : vector<8x128xf32>
    %146 = arith.negf %145 : vector<8x128xf32>
    %147 = math.exp %146 : vector<8x128xf32>
    %cst_33 = arith.constant 1.000000e+00 : f32
    %148 = vector.broadcast %cst_33 : f32 to vector<8x128xf32>
    %149 = arith.addf %148, %147 : vector<8x128xf32>
    %150 = arith.divf %148, %149 : vector<8x128xf32>
    %151 = vector.extract_strided_slice %143 {offsets = [0, 128], sizes = [8, 128], strides = [1, 1]} : vector<8x256xf32> to vector<8x128xf32>
    %152 = arith.addf %151, %139 : vector<8x128xf32>
    %153 = arith.negf %152 : vector<8x128xf32>
    %154 = math.exp %153 : vector<8x128xf32>
    %cst_34 = arith.constant 1.000000e+00 : f32
    %155 = vector.broadcast %cst_34 : f32 to vector<8x128xf32>
    %156 = arith.addf %155, %154 : vector<8x128xf32>
    %157 = arith.divf %155, %156 : vector<8x128xf32>
    %158 = arith.mulf %150, %141 : vector<8x128xf32>
    %159 = arith.truncf %158 : vector<8x128xf32> to vector<8x128xbf16>
    %cst_35 = arith.constant dense<0.000000e+00> : vector<8x128xf32>
    %160 = tpu.matmul %159, %5, %cst_35 {dimension_numbers = #tpu.dot_dimension_numbers<[1], [0], [0], [1], [0, 0, 1, 1], [], []>} : vector<8x128xbf16>, vector<128x128xbf16>, vector<8x128xf32> -> vector<8x128xf32>
    %161 = arith.addf %160, %140 : vector<8x128xf32>
    %162 = math.tanh %161 : vector<8x128xf32>
    %163 = arith.subf %162, %141 : vector<8x128xf32>
    %164 = arith.mulf %157, %163 : vector<8x128xf32>
    %165 = arith.addf %141, %164 : vector<8x128xf32>
    %c5_i32 = arith.constant 5 : i32
    %166 = arith.index_cast %c5_i32 : i32 to index
    %c0_36 = arith.constant 0 : index
    %c0_37 = arith.constant 0 : index
    %167 = vector.load %arg2[%166, %c0_36, %c0_37] : memref<8x8x512xf32, #tpu.memory_space<vmem>>, vector<1x8x512xf32>
    %168 = vector.shape_cast %167 : vector<1x8x512xf32> to vector<8x512xf32>
    %169 = vector.extract_strided_slice %168 {offsets = [0, 0], sizes = [8, 128], strides = [1, 1]} : vector<8x512xf32> to vector<8x128xf32>
    %170 = vector.extract_strided_slice %168 {offsets = [0, 128], sizes = [8, 128], strides = [1, 1]} : vector<8x512xf32> to vector<8x128xf32>
    %171 = vector.extract_strided_slice %168 {offsets = [0, 256], sizes = [8, 128], strides = [1, 1]} : vector<8x512xf32> to vector<8x128xf32>
    %172 = vector.extract_strided_slice %168 {offsets = [0, 384], sizes = [8, 128], strides = [1, 1]} : vector<8x512xf32> to vector<8x128xf32>
    %173 = arith.mulf %169, %165 : vector<8x128xf32>
    %174 = arith.truncf %173 : vector<8x128xf32> to vector<8x128xbf16>
    %cst_38 = arith.constant dense<0.000000e+00> : vector<8x256xf32>
    %175 = tpu.matmul %174, %4, %cst_38 {dimension_numbers = #tpu.dot_dimension_numbers<[1], [0], [0], [1], [0, 0, 1, 1], [], []>} : vector<8x128xbf16>, vector<128x256xbf16>, vector<8x256xf32> -> vector<8x256xf32>
    %176 = vector.extract_strided_slice %175 {offsets = [0, 0], sizes = [8, 128], strides = [1, 1]} : vector<8x256xf32> to vector<8x128xf32>
    %177 = arith.addf %176, %170 : vector<8x128xf32>
    %178 = arith.negf %177 : vector<8x128xf32>
    %179 = math.exp %178 : vector<8x128xf32>
    %cst_39 = arith.constant 1.000000e+00 : f32
    %180 = vector.broadcast %cst_39 : f32 to vector<8x128xf32>
    %181 = arith.addf %180, %179 : vector<8x128xf32>
    %182 = arith.divf %180, %181 : vector<8x128xf32>
    %183 = vector.extract_strided_slice %175 {offsets = [0, 128], sizes = [8, 128], strides = [1, 1]} : vector<8x256xf32> to vector<8x128xf32>
    %184 = arith.addf %183, %171 : vector<8x128xf32>
    %185 = arith.negf %184 : vector<8x128xf32>
    %186 = math.exp %185 : vector<8x128xf32>
    %cst_40 = arith.constant 1.000000e+00 : f32
    %187 = vector.broadcast %cst_40 : f32 to vector<8x128xf32>
    %188 = arith.addf %187, %186 : vector<8x128xf32>
    %189 = arith.divf %187, %188 : vector<8x128xf32>
    %190 = arith.mulf %182, %173 : vector<8x128xf32>
    %191 = arith.truncf %190 : vector<8x128xf32> to vector<8x128xbf16>
    %cst_41 = arith.constant dense<0.000000e+00> : vector<8x128xf32>
    %192 = tpu.matmul %191, %5, %cst_41 {dimension_numbers = #tpu.dot_dimension_numbers<[1], [0], [0], [1], [0, 0, 1, 1], [], []>} : vector<8x128xbf16>, vector<128x128xbf16>, vector<8x128xf32> -> vector<8x128xf32>
    %193 = arith.addf %192, %172 : vector<8x128xf32>
    %194 = math.tanh %193 : vector<8x128xf32>
    %195 = arith.subf %194, %173 : vector<8x128xf32>
    %196 = arith.mulf %189, %195 : vector<8x128xf32>
    %197 = arith.addf %173, %196 : vector<8x128xf32>
    %c6_i32 = arith.constant 6 : i32
    %198 = arith.index_cast %c6_i32 : i32 to index
    %c0_42 = arith.constant 0 : index
    %c0_43 = arith.constant 0 : index
    %199 = vector.load %arg2[%198, %c0_42, %c0_43] : memref<8x8x512xf32, #tpu.memory_space<vmem>>, vector<1x8x512xf32>
    %200 = vector.shape_cast %199 : vector<1x8x512xf32> to vector<8x512xf32>
    %201 = vector.extract_strided_slice %200 {offsets = [0, 0], sizes = [8, 128], strides = [1, 1]} : vector<8x512xf32> to vector<8x128xf32>
    %202 = vector.extract_strided_slice %200 {offsets = [0, 128], sizes = [8, 128], strides = [1, 1]} : vector<8x512xf32> to vector<8x128xf32>
    %203 = vector.extract_strided_slice %200 {offsets = [0, 256], sizes = [8, 128], strides = [1, 1]} : vector<8x512xf32> to vector<8x128xf32>
    %204 = vector.extract_strided_slice %200 {offsets = [0, 384], sizes = [8, 128], strides = [1, 1]} : vector<8x512xf32> to vector<8x128xf32>
    %205 = arith.mulf %201, %197 : vector<8x128xf32>
    %206 = arith.truncf %205 : vector<8x128xf32> to vector<8x128xbf16>
    %cst_44 = arith.constant dense<0.000000e+00> : vector<8x256xf32>
    %207 = tpu.matmul %206, %4, %cst_44 {dimension_numbers = #tpu.dot_dimension_numbers<[1], [0], [0], [1], [0, 0, 1, 1], [], []>} : vector<8x128xbf16>, vector<128x256xbf16>, vector<8x256xf32> -> vector<8x256xf32>
    %208 = vector.extract_strided_slice %207 {offsets = [0, 0], sizes = [8, 128], strides = [1, 1]} : vector<8x256xf32> to vector<8x128xf32>
    %209 = arith.addf %208, %202 : vector<8x128xf32>
    %210 = arith.negf %209 : vector<8x128xf32>
    %211 = math.exp %210 : vector<8x128xf32>
    %cst_45 = arith.constant 1.000000e+00 : f32
    %212 = vector.broadcast %cst_45 : f32 to vector<8x128xf32>
    %213 = arith.addf %212, %211 : vector<8x128xf32>
    %214 = arith.divf %212, %213 : vector<8x128xf32>
    %215 = vector.extract_strided_slice %207 {offsets = [0, 128], sizes = [8, 128], strides = [1, 1]} : vector<8x256xf32> to vector<8x128xf32>
    %216 = arith.addf %215, %203 : vector<8x128xf32>
    %217 = arith.negf %216 : vector<8x128xf32>
    %218 = math.exp %217 : vector<8x128xf32>
    %cst_46 = arith.constant 1.000000e+00 : f32
    %219 = vector.broadcast %cst_46 : f32 to vector<8x128xf32>
    %220 = arith.addf %219, %218 : vector<8x128xf32>
    %221 = arith.divf %219, %220 : vector<8x128xf32>
    %222 = arith.mulf %214, %205 : vector<8x128xf32>
    %223 = arith.truncf %222 : vector<8x128xf32> to vector<8x128xbf16>
    %cst_47 = arith.constant dense<0.000000e+00> : vector<8x128xf32>
    %224 = tpu.matmul %223, %5, %cst_47 {dimension_numbers = #tpu.dot_dimension_numbers<[1], [0], [0], [1], [0, 0, 1, 1], [], []>} : vector<8x128xbf16>, vector<128x128xbf16>, vector<8x128xf32> -> vector<8x128xf32>
    %225 = arith.addf %224, %204 : vector<8x128xf32>
    %226 = math.tanh %225 : vector<8x128xf32>
    %227 = arith.subf %226, %205 : vector<8x128xf32>
    %228 = arith.mulf %221, %227 : vector<8x128xf32>
    %229 = arith.addf %205, %228 : vector<8x128xf32>
    %c7_i32 = arith.constant 7 : i32
    %230 = arith.index_cast %c7_i32 : i32 to index
    %c0_48 = arith.constant 0 : index
    %c0_49 = arith.constant 0 : index
    %231 = vector.load %arg2[%230, %c0_48, %c0_49] : memref<8x8x512xf32, #tpu.memory_space<vmem>>, vector<1x8x512xf32>
    %232 = vector.shape_cast %231 : vector<1x8x512xf32> to vector<8x512xf32>
    %233 = vector.extract_strided_slice %232 {offsets = [0, 0], sizes = [8, 128], strides = [1, 1]} : vector<8x512xf32> to vector<8x128xf32>
    %234 = vector.extract_strided_slice %232 {offsets = [0, 128], sizes = [8, 128], strides = [1, 1]} : vector<8x512xf32> to vector<8x128xf32>
    %235 = vector.extract_strided_slice %232 {offsets = [0, 256], sizes = [8, 128], strides = [1, 1]} : vector<8x512xf32> to vector<8x128xf32>
    %236 = vector.extract_strided_slice %232 {offsets = [0, 384], sizes = [8, 128], strides = [1, 1]} : vector<8x512xf32> to vector<8x128xf32>
    %237 = arith.mulf %233, %229 : vector<8x128xf32>
    %238 = arith.truncf %237 : vector<8x128xf32> to vector<8x128xbf16>
    %cst_50 = arith.constant dense<0.000000e+00> : vector<8x256xf32>
    %239 = tpu.matmul %238, %4, %cst_50 {dimension_numbers = #tpu.dot_dimension_numbers<[1], [0], [0], [1], [0, 0, 1, 1], [], []>} : vector<8x128xbf16>, vector<128x256xbf16>, vector<8x256xf32> -> vector<8x256xf32>
    %240 = vector.extract_strided_slice %239 {offsets = [0, 0], sizes = [8, 128], strides = [1, 1]} : vector<8x256xf32> to vector<8x128xf32>
    %241 = arith.addf %240, %234 : vector<8x128xf32>
    %242 = arith.negf %241 : vector<8x128xf32>
    %243 = math.exp %242 : vector<8x128xf32>
    %cst_51 = arith.constant 1.000000e+00 : f32
    %244 = vector.broadcast %cst_51 : f32 to vector<8x128xf32>
    %245 = arith.addf %244, %243 : vector<8x128xf32>
    %246 = arith.divf %244, %245 : vector<8x128xf32>
    %247 = vector.extract_strided_slice %239 {offsets = [0, 128], sizes = [8, 128], strides = [1, 1]} : vector<8x256xf32> to vector<8x128xf32>
    %248 = arith.addf %247, %235 : vector<8x128xf32>
    %249 = arith.negf %248 : vector<8x128xf32>
    %250 = math.exp %249 : vector<8x128xf32>
    %cst_52 = arith.constant 1.000000e+00 : f32
    %251 = vector.broadcast %cst_52 : f32 to vector<8x128xf32>
    %252 = arith.addf %251, %250 : vector<8x128xf32>
    %253 = arith.divf %251, %252 : vector<8x128xf32>
    %254 = arith.mulf %246, %237 : vector<8x128xf32>
    %255 = arith.truncf %254 : vector<8x128xf32> to vector<8x128xbf16>
    %cst_53 = arith.constant dense<0.000000e+00> : vector<8x128xf32>
    %256 = tpu.matmul %255, %5, %cst_53 {dimension_numbers = #tpu.dot_dimension_numbers<[1], [0], [0], [1], [0, 0, 1, 1], [], []>} : vector<8x128xbf16>, vector<128x128xbf16>, vector<8x128xf32> -> vector<8x128xf32>
    %257 = arith.addf %256, %236 : vector<8x128xf32>
    %258 = math.tanh %257 : vector<8x128xf32>
    %259 = arith.subf %258, %237 : vector<8x128xf32>
    %260 = arith.mulf %253, %259 : vector<8x128xf32>
    %261 = arith.addf %237, %260 : vector<8x128xf32>
    %c8_i32 = arith.constant 8 : i32
    %c0_54 = arith.constant 0 : index
    %c0_55 = arith.constant 0 : index
    %262 = vector.load %arg5[%c0_54, %c0_55] : memref<8x128xf32, #tpu.memory_space<vmem>>, vector<8x128xf32>
    tpu.vector_store %arg5[%c0_54, %c0_55], %261 {strides = array<i32>} : memref<8x128xf32, #tpu.memory_space<vmem>>, vector<8x128xf32>,
    return
  }
  func.func @transform_0(%arg0: i32, %arg1: i32) -> (i32, i32, i32) {
    %c0_i32 = arith.constant 0 : i32
    %c0_i32_0 = arith.constant 0 : i32
    return %arg1, %arg0, %c0_i32 : i32, i32, i32
  }
  func.func @transform_1(%arg0: i32, %arg1: i32) -> (i32, i32) {
    %c0_i32 = arith.constant 0 : i32
    %c0_i32_0 = arith.constant 0 : i32
    %c0_i32_1 = arith.constant 0 : i32
    return %c0_i32, %c0_i32_0 : i32, i32
  }
  func.func @transform_2(%arg0: i32, %arg1: i32) -> (i32, i32) {
    %c0_i32 = arith.constant 0 : i32
    %c0_i32_0 = arith.constant 0 : i32
    %c0_i32_1 = arith.constant 0 : i32
    return %c0_i32, %c0_i32_0 : i32, i32
  }
  func.func @transform_3(%arg0: i32, %arg1: i32) -> (i32, i32) {
    %c0_i32 = arith.constant 0 : i32
    %c0_i32_0 = arith.constant 0 : i32
    return %arg0, %c0_i32 : i32, i32
  }
}

</mosaic_0001>

<bundles_post_ra>
// kernel: grui_encoder.1
= control target key start
LH: loop header
LB: loop body
LE: loop exit
PB: predicated region body
PF: predicated region fallthrough
CT: control target
= control target key end

     0   :  { %8 = vsyncpa [#allocation3], 0  ;;  %s1835_s12 = smov 0   ;;  %s1837_s13 = smov 0   ;;  %s2378_s0 = inlined_call_operand.vmem [shape: f32[16,8,512], index: 0, kind: input, shape index: {}]   ;;  %s2379_s1 = inlined_call_operand.vmem [shape: bf16[128,256], index: 1, kind: input, shape index: {}]   ;;  %s2380_s2 = inlined_call_operand.vmem [shape: bf16[128,128], index: 2, kind: input, shape index: {}]   ;;  %s2381_s3 = inlined_call_operand.hbm [shape: f32[8,128], index: 3, kind: output, shape index: {}]  }
   0x1   :  { %s1839_s14 = smov 0  }
   0x2 LB: > { %s1292_s15 = sadd.s32 4294967295, %s1808_s14   ;;  %s23_s16 = sadd.s32 1, %s1804_s13  ;;  %s1808_s14 = sphi %s1839_s14, %s14_s14   ;;  %s1804_s13 = sphi %s1837_s13, %s2384_s13   ;;  %s1800_s12 = sphi %s1835_s12, %s2383_s12  }
   0x3   : > { %p24_p0 = scmp.ge.s32.totalorder %s23_s16, 2  ;;  %p1295_p1 = scmp.ge.s32.totalorder %s1808_s14, 1 }
   0x4   : > { %p158_p2 = scmp.lt.s32.totalorder %s1808_s14, 3 }
   0x5   : > { %s2386_s16 = smov (%p24_p0, %s23_s16), 0 }
   0x6   : > { %p159_p3 = pnand %p1295_p1, %p158_p2 }
   0x7   : > { %s1296_s17 = sshll.u32 (!%p159_p3), %s1800_s12, 3  ;;  %p1299_p5 = scmp.ne.s32.totalorder (!%p159_p3), %s1800_s12, 0 }
   0x8   : > { %162 = sbr.rel (%p159_p3) target bundleno = 3654 (0xe46), region = 32  ;;  %p183_p4 = scmp.lt.s32.totalorder (!%p159_p3), %s1296_s17, 15 }
   0xd   : > { %s2388_s17 = smov (!%p183_p4, %s1296_s17), 15  ;;  %197 = sbr.rel (%p1299_p5) target bundleno = 20 (0x14), region = 36 }
   0xe   : > { %s1372_s18 = sshll.u32 %s2388_s17, 5 }
   0xf   : > { %s1857_s21 = scalar_lea.vmem %s2378_s0, %s1372_s18 }
  0x12   : > { %v1810_v0 = vmov 0.0  }
  0x13   : > { %198 = vst [vmem:[#allocation2] sm:$0xff] %v1810_v0 }
  0x14 PF: > { %v1862_v1 = vld [vmem:[%s2379_s1 + $0x74] ss:$8 sps:$4 sm:$0xff]   ;;  %v1867_v2 = vld [vmem:[%s2379_s1 + $0x70] ss:$8 sps:$4 sm:$0xff]   ;;  %v1811_v3 = vmov 0   ;;  %v232_v17 = vld [vmem:[%s1857_s21] sm:$0xff] }
  0x15   : > { %350 = vmatprep.mubr.bf16.mxu0 %v1811_v3  ;;  %318 = vmatprep.subr.bf16.mxu0 %v1862_v1  ;;  %v1874_v4 = vld [vmem:[%s2379_s1 + $0x64] ss:$8 sps:$4 sm:$0xff]   ;;  %v1880_v5 = vld [vmem:[%s2379_s1 + $0x60] ss:$8 sps:$4 sm:$0xff]   ;;  %v1886_v6 = vld [vmem:[%s2379_s1 + $0x54] ss:$8 sps:$4 sm:$0xff]  }
  0x16   : > { %319 = vmatpush1.bf16.msra.mxu0 %v1867_v2  ;;  %v1892_v7 = vld [vmem:[%s2379_s1 + $0x50] ss:$8 sps:$4 sm:$0xff]   ;;  %v1898_v8 = vld [vmem:[%s2379_s1 + $0x44] ss:$8 sps:$4 sm:$0xff]   ;;  %v1904_v9 = vld [vmem:[%s2379_s1 + $0x40] ss:$8 sps:$4 sm:$0xff]  }
  0x17   : > { %320 = vmatprep.subr.bf16.mxu0 %v1874_v4  ;;  %v1909_v10 = vld [vmem:[%s2379_s1 + $0x34] ss:$8 sps:$4 sm:$0xff]   ;;  %v1915_v11 = vld [vmem:[%s2379_s1 + $0x30] ss:$8 sps:$4 sm:$0xff]   ;;  %v1920_v12 = vld [vmem:[%s2379_s1 + $0x24] ss:$8 sps:$4 sm:$0xff]  }
  0x18   : > { %v1928_v13 = vld [vmem:[%s2379_s1 + $0x20] ss:$8 sps:$4 sm:$0xff]   ;;  %v1934_v14 = vld [vmem:[%s2379_s1 + $0x14] ss:$8 sps:$4 sm:$0xff]   ;;  %v1940_v15 = vld [vmem:[%s2379_s1 + $0x10] ss:$8 sps:$4 sm:$0xff]  }
  0x19   : > { %v1947_v18 = vld [vmem:[%s2379_s1 + $0x4] ss:$8 sps:$4 sm:$0xff]   ;;  %v1955_v20 = vld [vmem:[%s2379_s1] ss:$8 sps:$4 sm:$0xff]   ;;  %v1982_v22 = vld [vmem:[%s2380_s2 + $0x38] sm:$0xff]   ;;  %v1812_v23 = vmov 0.0  }
  0x1a   : > { %321 = vmatpush1.bf16.msra.mxu0 %v1880_v5  ;;  %v199_v16 = vld [vmem:[#allocation2] sm:$0xff]  ;;  %1445 = vmatprep.subr.bf16.mxu1 %v1812_v23  ;;  %v1990_v24 = vld [vmem:[%s2380_s2 + $0x30] sm:$0xff]   ;;  %v1997_v25 = vld [vmem:[%s2380_s2 + $0x28] sm:$0xff]   ;;  %vm1813_vm0 = vmmov 0   ;;  %s1814_s11 = smov [#allocation2]   ;;  %p2354_p6 = scmp.eq.s32.totalorder %s1292_s15, 1 }
  0x1b   : > { %322 = vmatprep.subr.bf16.mxu0 %v1886_v6  ;;  %v1949_v19 = vmul.f32 %v232_v17, %v199_v16  ;;  %1446 = vmatpush3.bf16.msra.mxu1 %v1982_v22  ;;  %v2004_v26 = vld [vmem:[%s2380_s2 + $0x20] sm:$0xff]   ;;  %v2011_v27 = vld [vmem:[%s2380_s2 + $0x18] sm:$0xff]   ;;  %v2017_v28 = vld [vmem:[%s2380_s2 + $0x10] sm:$0xff]   ;;  %s1233_s12 = sshll.u32 %s1814_s11, 4  ;;  %s1234_s12 = int_to_ptr.vmem [resolvable:$true] %s1233_s12 }
  0x1c   : > { %1447 = vmatprep.subr.bf16.mxu1 %v1812_v23  ;;  %1461 = vmatprep.mubr.msk.bf16.mxu1 %vm1813_vm0, %v1812_v23  ;;  %v2026_v29 = vld [vmem:[%s2380_s2 + $0x8] sm:$0xff]   ;;  %v2033_v30 = vld [vmem:[%s2380_s2] sm:$0xff]   ;;  %v234_v43 = vld [vmem:[%s1857_s21 + $0x10] sm:$0xff]  ;;  %p1765_p10 = scmp.lt.s32.totalorder %s1234_s12, %s1234_s12 }
  0x1d   : > { %v237_v21 = vpack.c.bf16 %v1949_v19, %v1949_v19  ;;  %v233_v31 = vld [vmem:[%s1857_s21 + $0x8] sm:$0xff]  ;;  %v235_v47 = vld [vmem:[%s1857_s21 + $0x18] sm:$0xff]  ;;  %v1326_v58 = vld [vmem:[%s1857_s21 + $0x20] sm:$0xff] }
  0x1e   : > { %323 = vmatpush1.bf16.msra.mxu0 %v1892_v7  ;;  %v1327_v62 = vld [vmem:[%s1857_s21 + $0x28] sm:$0xff] }
  0x1f   : > { %324 = vmatprep.subr.bf16.mxu0 %v1898_v8  ;;  %1448 = vmatpush3.bf16.msra.mxu1 %v1990_v24 }
  0x20   : > { %1449 = vmatprep.subr.bf16.mxu1 %v1812_v23 }
  0x22   : > { %325 = vmatpush1.bf16.msra.mxu0 %v1904_v9 }
  0x23   : > { %326 = vmatprep.subr.bf16.mxu0 %v1909_v10  ;;  %1450 = vmatpush3.bf16.msra.mxu1 %v1997_v25 }
  0x24   : > { %1451 = vmatprep.subr.bf16.mxu1 %v1812_v23 }
  0x26   : > { %327 = vmatpush1.bf16.msra.mxu0 %v1915_v11 }
  0x27   : > { %328 = vmatprep.subr.bf16.mxu0 %v1920_v12  ;;  %1452 = vmatpush3.bf16.msra.mxu1 %v2004_v26 }
  0x28   : > { %1453 = vmatprep.subr.bf16.mxu1 %v1812_v23 }
  0x2a   : > { %329 = vmatpush1.bf16.msra.mxu0 %v1928_v13 }
  0x2b   : > { %330 = vmatprep.subr.bf16.mxu0 %v1934_v14  ;;  %1454 = vmatpush3.bf16.msra.mxu1 %v2011_v27 }
  0x2c   : > { %1455 = vmatprep.subr.bf16.mxu1 %v1812_v23 }
  0x2e   : > { %331 = vmatpush1.bf16.msra.mxu0 %v1940_v15 }
  0x2f   : > { %332 = vmatprep.subr.bf16.mxu0 %v1947_v18  ;;  %1456 = vmatpush3.bf16.msra.mxu1 %v2017_v28 }
  0x30   : > { %1457 = vmatprep.subr.bf16.mxu1 %v1812_v23 }
  0x32   : > { %333 = vmatpush1.bf16.msra.mxu0 %v1955_v20 }
  0x33   : > { %474 = vmatprep.subr.bf16.mxu0 %v1862_v1  ;;  %1458 = vmatpush3.bf16.msra.mxu1 %v2026_v29 }
  0x34   : > { %1459 = vmatprep.subr.bf16.mxu1 %v1812_v23 }
  0x35   : > { %351 = vmatmul.mubr.bf16.vlgmr.msra.gmra.mxu0 %v237_v21 }
  0x36   : > { %475 = vmatpush1.bf16.msra.mxu0 %v1867_v2  ;;  %506 = vmatprep.mubr.bf16.mxu0 %v1811_v3 }
  0x37   : > { %476 = vmatprep.subr.bf16.mxu0 %v1874_v4  ;;  %1460 = vmatpush3.bf16.msra.mxu1 %v2033_v30 }
  0x38   : > { %1465 = vmatprep.subr.bf16.mxu1 %v1812_v23 }
  0x3a   : > { %477 = vmatpush1.bf16.msra.mxu0 %v1880_v5 }
  0x3b   : > { %478 = vmatprep.subr.bf16.mxu0 %v1886_v6 }
  0x3e   : > { %479 = vmatpush1.bf16.msra.mxu0 %v1892_v7 }
  0x3f   : > { %480 = vmatprep.subr.bf16.mxu0 %v1898_v8 }
  0x42   : > { %481 = vmatpush1.bf16.msra.mxu0 %v1904_v9 }
  0x43   : > { %482 = vmatprep.subr.bf16.mxu0 %v1909_v10 }
  0x46   : > { %483 = vmatpush1.bf16.msra.mxu0 %v1915_v11 }
  0x47   : > { %484 = vmatprep.subr.bf16.mxu0 %v1920_v12 }
  0x4a   : > { %485 = vmatpush1.bf16.msra.mxu0 %v1928_v13 }
  0x4b   : > { %486 = vmatprep.subr.bf16.mxu0 %v1934_v14 }
  0x4e   : > { %487 = vmatpush1.bf16.msra.mxu0 %v1940_v15 }
  0x4f   : > { %488 = vmatprep.subr.bf16.mxu0 %v1947_v18 }
  0x52   : > { %489 = vmatpush1.bf16.msra.mxu0 %v1955_v20 }
  0x53   : > { %582 = vmatprep.subr.bf16.mxu0 %v1862_v1 }
  0xf5   : > { %v352_v32 = vpop.f32.mrf.mxu0 }
  0xf6   : > { %v359_v33 = vadd.f32 %v352_v32, %v233_v31 }
  0xf7   : > { %v354_v34 = vpop.f32.mrf.mxu0 }
  0xf8   : > { %v1316_v35 = vmul.f32 -1.442695, %v359_v33  ;;  %v366_v44 = vadd.f32 %v354_v34, %v234_v43 }
  0xf9   : > { %v356_v36 = vpop.f32.mrf.mxu0 }
  0xfa   : > { %1672 = vpow2.f32 %v1316_v35  ;;  %v1317_v45 = vmul.f32 -1.442695, %v366_v44  ;;  %v1328_v36 = vld [vmem:[%s1857_s21 + $0x30] sm:$0xff] }
  0xfb   : > { %v357_v37 = vpop.f32.mrf.mxu0 }
 0x107   : > { %v1673_v38 = vpop.eup %1672 }
 0x108   : > { %v363_v39 = vadd.f32 1.0, %v1673_v38 }
 0x10a   : > { %1674 = vrcp.f32 %v363_v39 }
 0x10b   : > { %1676 = vpow2.f32 %v1317_v45 }
 0x117   : > { %v1675_v40 = vpop.eup %1674 }
 0x118   : > { %v373_v41 = vmul.f32 %v1675_v40, %v1949_v19  ;;  %v1677_v46 = vpop.eup %1676  ;;  %v1329_v40 = vld [vmem:[%s1857_s21 + $0x38] sm:$0xff] }
 0x119   : > { %v370_v49 = vadd.f32 1.0, %v1677_v46 }
 0x11a   : > { %v374_v42 = vpack.c.bf16 %v373_v41, %v373_v41 }
 0x11c   : > { %1462 = vmatmul.mubr.bf16.vlgmr.msra.gmra.mxu1 %v374_v42 }
 0x11d   : > { %1466 = vmatpush3.bf16.msra.mxu1 %v1982_v22  ;;  %1481 = vmatprep.mubr.msk.bf16.mxu1 %vm1813_vm0, %v1812_v23 }
 0x11e   : > { %1467 = vmatprep.subr.bf16.mxu1 %v1812_v23 }
 0x121   : > { %1468 = vmatpush3.bf16.msra.mxu1 %v1990_v24 }
 0x122   : > { %1469 = vmatprep.subr.bf16.mxu1 %v1812_v23 }
 0x125   : > { %1470 = vmatpush3.bf16.msra.mxu1 %v1997_v25 }
 0x126   : > { %1471 = vmatprep.subr.bf16.mxu1 %v1812_v23 }
 0x129   : > { %1472 = vmatpush3.bf16.msra.mxu1 %v2004_v26 }
 0x12a   : > { %1473 = vmatprep.subr.bf16.mxu1 %v1812_v23 }
 0x12d   : > { %1474 = vmatpush3.bf16.msra.mxu1 %v2011_v27 }
 0x12e   : > { %1475 = vmatprep.subr.bf16.mxu1 %v1812_v23 }
 0x131   : > { %1476 = vmatpush3.bf16.msra.mxu1 %v2017_v28 }
 0x132   : > { %1477 = vmatprep.subr.bf16.mxu1 %v1812_v23 }
 0x135   : > { %1478 = vmatpush3.bf16.msra.mxu1 %v2026_v29 }
 0x136   : > { %1479 = vmatprep.subr.bf16.mxu1 %v1812_v23 }
 0x139   : > { %1480 = vmatpush3.bf16.msra.mxu1 %v2033_v30 }
 0x13a   : > { %1485 = vmatprep.subr.bf16.mxu1 %v1812_v23 }
 0x1dc   : > { %v457_v48 = vpop.f32.mrf.mxu1 }
 0x1dd   : > { %v458_v50 = vadd.f32 %v457_v48, %v235_v47 }
 0x1de   : > { %v1463_v51 = vpop.f32.mrf.mxu1 }
 0x1df   : > { %1678 = vtanh.f32 %v458_v50  ;;  %v1332_v51 = vld [vmem:[%s1857_s21 + $0x40] sm:$0xff] }
 0x1e0   : > { %v460_v52 = vpop.f32.mrf.mxu1  ;;  %1680 = vrcp.f32 %v370_v49 }
 0x1e2   : > { %v1464_v53 = vpop.f32.mrf.mxu1 }
 0x1ec   : > { %v1679_v54 = vpop.eup %1678 }
 0x1ed   : > { %v464_v55 = vsub.f32 %v1679_v54, %v1949_v19  ;;  %v1681_v56 = vpop.eup %1680 }
 0x1ef   : > { %v465_v57 = vmul.f32 %v1681_v56, %v464_v55  ;;  %v1333_v55 = vld [vmem:[%s1857_s21 + $0x48] sm:$0xff] }
 0x1f1   : > { %v466_v59 = vadd.f32 %v465_v57, %v1949_v19 }
 0x1f3   : > { %v2063_v60 = vmul.f32 %v1326_v58, %v466_v59 }
 0x1f5   : > { %v473_v61 = vpack.c.bf16 %v2063_v60, %v2063_v60 }
 0x1f7   : > { %507 = vmatmul.mubr.bf16.vlgmr.msra.gmra.mxu0 %v473_v61 }
 0x1f8   : > { %583 = vmatpush1.bf16.msra.mxu0 %v1867_v2  ;;  %614 = vmatprep.mubr.bf16.mxu0 %v1811_v3 }
 0x1f9   : > { %584 = vmatprep.subr.bf16.mxu0 %v1874_v4 }
 0x1fc   : > { %585 = vmatpush1.bf16.msra.mxu0 %v1880_v5 }
 0x1fd   : > { %586 = vmatprep.subr.bf16.mxu0 %v1886_v6 }
 0x200   : > { %587 = vmatpush1.bf16.msra.mxu0 %v1892_v7 }
 0x201   : > { %588 = vmatprep.subr.bf16.mxu0 %v1898_v8 }
 0x204   : > { %589 = vmatpush1.bf16.msra.mxu0 %v1904_v9 }
 0x205   : > { %590 = vmatprep.subr.bf16.mxu0 %v1909_v10 }
 0x208   : > { %591 = vmatpush1.bf16.msra.mxu0 %v1915_v11 }
 0x209   : > { %592 = vmatprep.subr.bf16.mxu0 %v1920_v12 }
 0x20c   : > { %593 = vmatpush1.bf16.msra.mxu0 %v1928_v13 }
 0x20d   : > { %594 = vmatprep.subr.bf16.mxu0 %v1934_v14 }
 0x210   : > { %595 = vmatpush1.bf16.msra.mxu0 %v1940_v15 }
 0x211   : > { %596 = vmatprep.subr.bf16.mxu0 %v1947_v18 }
 0x214   : > { %597 = vmatpush1.bf16.msra.mxu0 %v1955_v20 }
 0x215   : > { %690 = vmatprep.subr.bf16.mxu0 %v1862_v1 }
 0x2b7   : > { %v508_v63 = vpop.f32.mrf.mxu0 }
 0x2b8   : > { %v515_v0 = vadd.f32 %v1327_v62, %v508_v63 }
 0x2b9   : > { %v510_v16 = vpop.f32.mrf.mxu0 }
 0x2ba   : > { %v1330_v17 = vmul.f32 -1.442695, %v515_v0  ;;  %v522_v37 = vadd.f32 %v1328_v36, %v510_v16 }
 0x2bb   : > { %v512_v19 = vpop.f32.mrf.mxu0 }
 0x2bc   : > { %1682 = vpow2.f32 %v1330_v17  ;;  %v1331_v38 = vmul.f32 -1.442695, %v522_v37  ;;  %v1334_v19 = vld [vmem:[%s1857_s21 + $0x50] sm:$0xff] }
 0x2bd   : > { %v513_v21 = vpop.f32.mrf.mxu0 }
 0x2c9   : > { %v1683_v31 = vpop.eup %1682 }
 0x2ca   : > { %v519_v32 = vadd.f32 1.0, %v1683_v31 }
 0x2cc   : > { %1684 = vrcp.f32 %v519_v32 }
 0x2cd   : > { %1686 = vpow2.f32 %v1331_v38 }
 0x2d9   : > { %v1685_v33 = vpop.eup %1684 }
 0x2da   : > { %v529_v34 = vmul.f32 %v1685_v33, %v2063_v60  ;;  %v1687_v39 = vpop.eup %1686  ;;  %v1335_v33 = vld [vmem:[%s1857_s21 + $0x58] sm:$0xff] }
 0x2db   : > { %v526_v42 = vadd.f32 1.0, %v1687_v39 }
 0x2dc   : > { %v530_v35 = vpack.c.bf16 %v529_v34, %v529_v34 }
 0x2de   : > { %1482 = vmatmul.mubr.bf16.vlgmr.msra.gmra.mxu1 %v530_v35 }
 0x2df   : > { %1486 = vmatpush3.bf16.msra.mxu1 %v1982_v22  ;;  %1501 = vmatprep.mubr.msk.bf16.mxu1 %vm1813_vm0, %v1812_v23 }
 0x2e0   : > { %1487 = vmatprep.subr.bf16.mxu1 %v1812_v23 }
 0x2e3   : > { %1488 = vmatpush3.bf16.msra.mxu1 %v1990_v24 }
 0x2e4   : > { %1489 = vmatprep.subr.bf16.mxu1 %v1812_v23 }
 0x2e7   : > { %1490 = vmatpush3.bf16.msra.mxu1 %v1997_v25 }
 0x2e8   : > { %1491 = vmatprep.subr.bf16.mxu1 %v1812_v23 }
 0x2eb   : > { %1492 = vmatpush3.bf16.msra.mxu1 %v2004_v26 }
 0x2ec   : > { %1493 = vmatprep.subr.bf16.mxu1 %v1812_v23 }
 0x2ef   : > { %1494 = vmatpush3.bf16.msra.mxu1 %v2011_v27 }
 0x2f0   : > { %1495 = vmatprep.subr.bf16.mxu1 %v1812_v23 }
 0x2f3   : > { %1496 = vmatpush3.bf16.msra.mxu1 %v2017_v28 }
 0x2f4   : > { %1497 = vmatprep.subr.bf16.mxu1 %v1812_v23 }
 0x2f7   : > { %1498 = vmatpush3.bf16.msra.mxu1 %v2026_v29 }
 0x2f8   : > { %1499 = vmatprep.subr.bf16.mxu1 %v1812_v23 }
 0x2fb   : > { %1500 = vmatpush3.bf16.msra.mxu1 %v2033_v30 }
 0x2fc   : > { %1505 = vmatprep.subr.bf16.mxu1 %v1812_v23 }
 0x39e   : > { %v565_v41 = vpop.f32.mrf.mxu1 }
 0x39f   : > { %v566_v43 = vadd.f32 %v1329_v40, %v565_v41 }
 0x3a0   : > { %v1483_v44 = vpop.f32.mrf.mxu1 }
 0x3a1   : > { %1688 = vtanh.f32 %v566_v43  ;;  %v1338_v44 = vld [vmem:[%s1857_s21 + $0x60] sm:$0xff] }
 0x3a2   : > { %v568_v45 = vpop.f32.mrf.mxu1  ;;  %1690 = vrcp.f32 %v526_v42 }
 0x3a4   : > { %v1484_v46 = vpop.f32.mrf.mxu1 }
 0x3ae   : > { %v1689_v47 = vpop.eup %1688 }
 0x3af   : > { %v572_v48 = vsub.f32 %v1689_v47, %v2063_v60  ;;  %v1691_v49 = vpop.eup %1690 }
 0x3b1   : > { %v573_v50 = vmul.f32 %v1691_v49, %v572_v48  ;;  %v1339_v48 = vld [vmem:[%s1857_s21 + $0x68] sm:$0xff] }
 0x3b3   : > { %v574_v52 = vadd.f32 %v573_v50, %v2063_v60 }
 0x3b5   : > { %v2109_v53 = vmul.f32 %v1332_v51, %v574_v52 }
 0x3b7   : > { %v581_v54 = vpack.c.bf16 %v2109_v53, %v2109_v53 }
 0x3b9   : > { %615 = vmatmul.mubr.bf16.vlgmr.msra.gmra.mxu0 %v581_v54 }
 0x3ba   : > { %691 = vmatpush1.bf16.msra.mxu0 %v1867_v2  ;;  %722 = vmatprep.mubr.bf16.mxu0 %v1811_v3 }
 0x3bb   : > { %692 = vmatprep.subr.bf16.mxu0 %v1874_v4 }
 0x3be   : > { %693 = vmatpush1.bf16.msra.mxu0 %v1880_v5 }
 0x3bf   : > { %694 = vmatprep.subr.bf16.mxu0 %v1886_v6 }
 0x3c2   : > { %695 = vmatpush1.bf16.msra.mxu0 %v1892_v7 }
 0x3c3   : > { %696 = vmatprep.subr.bf16.mxu0 %v1898_v8 }
 0x3c6   : > { %697 = vmatpush1.bf16.msra.mxu0 %v1904_v9 }
 0x3c7   : > { %698 = vmatprep.subr.bf16.mxu0 %v1909_v10 }
 0x3ca   : > { %699 = vmatpush1.bf16.msra.mxu0 %v1915_v11 }
 0x3cb   : > { %700 = vmatprep.subr.bf16.mxu0 %v1920_v12 }
 0x3ce   : > { %701 = vmatpush1.bf16.msra.mxu0 %v1928_v13 }
 0x3cf   : > { %702 = vmatprep.subr.bf16.mxu0 %v1934_v14 }
 0x3d2   : > { %703 = vmatpush1.bf16.msra.mxu0 %v1940_v15 }
 0x3d3   : > { %704 = vmatprep.subr.bf16.mxu0 %v1947_v18 }
 0x3d6   : > { %705 = vmatpush1.bf16.msra.mxu0 %v1955_v20 }
 0x3d7   : > { %798 = vmatprep.subr.bf16.mxu0 %v1862_v1 }
 0x479   : > { %v616_v56 = vpop.f32.mrf.mxu0 }
 0x47a   : > { %v623_v57 = vadd.f32 %v1333_v55, %v616_v56 }
 0x47b   : > { %v618_v58 = vpop.f32.mrf.mxu0 }
 0x47c   : > { %v1336_v59 = vmul.f32 -1.442695, %v623_v57  ;;  %v630_v21 = vadd.f32 %v1334_v19, %v618_v58 }
 0x47d   : > { %v620_v60 = vpop.f32.mrf.mxu0 }
 0x47e   : > { %1692 = vpow2.f32 %v1336_v59  ;;  %v1337_v31 = vmul.f32 -1.442695, %v630_v21  ;;  %v1340_v60 = vld [vmem:[%s1857_s21 + $0x70] sm:$0xff] }
 0x47f   : > { %v621_v61 = vpop.f32.mrf.mxu0 }
 0x48b   : > { %v1693_v62 = vpop.eup %1692 }
 0x48c   : > { %v627_v63 = vadd.f32 1.0, %v1693_v62 }
 0x48e   : > { %1694 = vrcp.f32 %v627_v63 }
 0x48f   : > { %1696 = vpow2.f32 %v1337_v31 }
 0x49b   : > { %v1695_v0 = vpop.eup %1694 }
 0x49c   : > { %v637_v16 = vmul.f32 %v1695_v0, %v2109_v53  ;;  %v1697_v32 = vpop.eup %1696  ;;  %v1341_v0 = vld [vmem:[%s1857_s21 + $0x78] sm:$0xff] }
 0x49d   : > { %v634_v35 = vadd.f32 1.0, %v1697_v32 }
 0x49e   : > { %v638_v17 = vpack.c.bf16 %v637_v16, %v637_v16 }
 0x4a0   : > { %1502 = vmatmul.mubr.bf16.vlgmr.msra.gmra.mxu1 %v638_v17 }
 0x4a1   : > { %1506 = vmatpush3.bf16.msra.mxu1 %v1982_v22  ;;  %1521 = vmatprep.mubr.msk.bf16.mxu1 %vm1813_vm0, %v1812_v23 }
 0x4a2   : > { %1507 = vmatprep.subr.bf16.mxu1 %v1812_v23 }
 0x4a5   : > { %1508 = vmatpush3.bf16.msra.mxu1 %v1990_v24 }
 0x4a6   : > { %1509 = vmatprep.subr.bf16.mxu1 %v1812_v23 }
 0x4a9   : > { %1510 = vmatpush3.bf16.msra.mxu1 %v1997_v25 }
 0x4aa   : > { %1511 = vmatprep.subr.bf16.mxu1 %v1812_v23 }
 0x4ad   : > { %1512 = vmatpush3.bf16.msra.mxu1 %v2004_v26 }
 0x4ae   : > { %1513 = vmatprep.subr.bf16.mxu1 %v1812_v23 }
 0x4b1   : > { %1514 = vmatpush3.bf16.msra.mxu1 %v2011_v27 }
 0x4b2   : > { %1515 = vmatprep.subr.bf16.mxu1 %v1812_v23 }
 0x4b5   : > { %1516 = vmatpush3.bf16.msra.mxu1 %v2017_v28 }
 0x4b6   : > { %1517 = vmatprep.subr.bf16.mxu1 %v1812_v23 }
 0x4b9   : > { %1518 = vmatpush3.bf16.msra.mxu1 %v2026_v29 }
 0x4ba   : > { %1519 = vmatprep.subr.bf16.mxu1 %v1812_v23 }
 0x4bd   : > { %1520 = vmatpush3.bf16.msra.mxu1 %v2033_v30 }
 0x4be   : > { %1525 = vmatprep.subr.bf16.mxu1 %v1812_v23 }
 0x560   : > { %v673_v34 = vpop.f32.mrf.mxu1 }
 0x561   : > { %v674_v36 = vadd.f32 %v1335_v33, %v673_v34 }
 0x562   : > { %v1503_v37 = vpop.f32.mrf.mxu1 }
 0x563   : > { %1698 = vtanh.f32 %v674_v36  ;;  %v1344_v37 = vld [vmem:[%s1857_s21 + $0x80] sm:$0xff] }
 0x564   : > { %v676_v38 = vpop.f32.mrf.mxu1  ;;  %1700 = vrcp.f32 %v634_v35 }
 0x566   : > { %v1504_v39 = vpop.f32.mrf.mxu1 }
 0x570   : > { %v1699_v40 = vpop.eup %1698 }
 0x571   : > { %v680_v41 = vsub.f32 %v1699_v40, %v2109_v53  ;;  %v1701_v42 = vpop.eup %1700 }
 0x573   : > { %v681_v43 = vmul.f32 %v1701_v42, %v680_v41  ;;  %v1345_v41 = vld [vmem:[%s1857_s21 + $0x88] sm:$0xff] }
 0x575   : > { %v682_v45 = vadd.f32 %v681_v43, %v2109_v53 }
 0x577   : > { %v2155_v46 = vmul.f32 %v1338_v44, %v682_v45 }
 0x579   : > { %v689_v47 = vpack.c.bf16 %v2155_v46, %v2155_v46 }
 0x57b   : > { %723 = vmatmul.mubr.bf16.vlgmr.msra.gmra.mxu0 %v689_v47 }
 0x57c   : > { %799 = vmatpush1.bf16.msra.mxu0 %v1867_v2  ;;  %830 = vmatprep.mubr.bf16.mxu0 %v1811_v3 }
 0x57d   : > { %800 = vmatprep.subr.bf16.mxu0 %v1874_v4 }
 0x580   : > { %801 = vmatpush1.bf16.msra.mxu0 %v1880_v5 }
 0x581   : > { %802 = vmatprep.subr.bf16.mxu0 %v1886_v6 }
 0x584   : > { %803 = vmatpush1.bf16.msra.mxu0 %v1892_v7 }
 0x585   : > { %804 = vmatprep.subr.bf16.mxu0 %v1898_v8 }
 0x588   : > { %805 = vmatpush1.bf16.msra.mxu0 %v1904_v9 }
 0x589   : > { %806 = vmatprep.subr.bf16.mxu0 %v1909_v10 }
 0x58c   : > { %807 = vmatpush1.bf16.msra.mxu0 %v1915_v11 }
 0x58d   : > { %808 = vmatprep.subr.bf16.mxu0 %v1920_v12 }
 0x590   : > { %809 = vmatpush1.bf16.msra.mxu0 %v1928_v13 }
 0x591   : > { %810 = vmatprep.subr.bf16.mxu0 %v1934_v14 }
 0x594   : > { %811 = vmatpush1.bf16.msra.mxu0 %v1940_v15 }
 0x595   : > { %812 = vmatprep.subr.bf16.mxu0 %v1947_v18 }
 0x598   : > { %813 = vmatpush1.bf16.msra.mxu0 %v1955_v20 }
 0x599   : > { %906 = vmatprep.subr.bf16.mxu0 %v1862_v1 }
 0x63b   : > { %v724_v49 = vpop.f32.mrf.mxu0 }
 0x63c   : > { %v731_v50 = vadd.f32 %v1339_v48, %v724_v49 }
 0x63d   : > { %v726_v51 = vpop.f32.mrf.mxu0 }
 0x63e   : > { %v1342_v52 = vmul.f32 -1.442695, %v731_v50  ;;  %v738_v61 = vadd.f32 %v1340_v60, %v726_v51 }
 0x63f   : > { %v728_v53 = vpop.f32.mrf.mxu0 }
 0x640   : > { %1702 = vpow2.f32 %v1342_v52  ;;  %v1343_v62 = vmul.f32 -1.442695, %v738_v61  ;;  %v1346_v53 = vld [vmem:[%s1857_s21 + $0x90] sm:$0xff] }
 0x641   : > { %v729_v54 = vpop.f32.mrf.mxu0 }
 0x64d   : > { %v1703_v55 = vpop.eup %1702 }
 0x64e   : > { %v735_v56 = vadd.f32 1.0, %v1703_v55 }
 0x650   : > { %1704 = vrcp.f32 %v735_v56 }
 0x651   : > { %1706 = vpow2.f32 %v1343_v62 }
 0x65d   : > { %v1705_v57 = vpop.eup %1704 }
 0x65e   : > { %v745_v58 = vmul.f32 %v1705_v57, %v2155_v46  ;;  %v1707_v63 = vpop.eup %1706  ;;  %v1347_v57 = vld [vmem:[%s1857_s21 + $0x98] sm:$0xff] }
 0x65f   : > { %v742_v17 = vadd.f32 1.0, %v1707_v63 }
 0x660   : > { %v746_v59 = vpack.c.bf16 %v745_v58, %v745_v58 }
 0x662   : > { %1522 = vmatmul.mubr.bf16.vlgmr.msra.gmra.mxu1 %v746_v59 }
 0x663   : > { %1526 = vmatpush3.bf16.msra.mxu1 %v1982_v22  ;;  %1541 = vmatprep.mubr.msk.bf16.mxu1 %vm1813_vm0, %v1812_v23 }
 0x664   : > { %1527 = vmatprep.subr.bf16.mxu1 %v1812_v23 }
 0x667   : > { %1528 = vmatpush3.bf16.msra.mxu1 %v1990_v24 }
 0x668   : > { %1529 = vmatprep.subr.bf16.mxu1 %v1812_v23 }
 0x66b   : > { %1530 = vmatpush3.bf16.msra.mxu1 %v1997_v25 }
 0x66c   : > { %1531 = vmatprep.subr.bf16.mxu1 %v1812_v23 }
 0x66f   : > { %1532 = vmatpush3.bf16.msra.mxu1 %v2004_v26 }
 0x670   : > { %1533 = vmatprep.subr.bf16.mxu1 %v1812_v23 }
 0x673   : > { %1534 = vmatpush3.bf16.msra.mxu1 %v2011_v27 }
 0x674   : > { %1535 = vmatprep.subr.bf16.mxu1 %v1812_v23 }
 0x677   : > { %1536 = vmatpush3.bf16.msra.mxu1 %v2017_v28 }
 0x678   : > { %1537 = vmatprep.subr.bf16.mxu1 %v1812_v23 }
 0x67b   : > { %1538 = vmatpush3.bf16.msra.mxu1 %v2026_v29 }
 0x67c   : > { %1539 = vmatprep.subr.bf16.mxu1 %v1812_v23 }
 0x67f   : > { %1540 = vmatpush3.bf16.msra.mxu1 %v2033_v30 }
 0x680   : > { %1545 = vmatprep.subr.bf16.mxu1 %v1812_v23 }
 0x722   : > { %v781_v16 = vpop.f32.mrf.mxu1 }
 0x723   : > { %v782_v19 = vadd.f32 %v1341_v0, %v781_v16 }
 0x724   : > { %v1523_v21 = vpop.f32.mrf.mxu1 }
 0x725   : > { %1708 = vtanh.f32 %v782_v19  ;;  %v1350_v21 = vld [vmem:[%s1857_s21 + $0xa0] sm:$0xff] }
 0x726   : > { %v784_v31 = vpop.f32.mrf.mxu1  ;;  %1710 = vrcp.f32 %v742_v17 }
 0x728   : > { %v1524_v32 = vpop.f32.mrf.mxu1 }
 0x732   : > { %v1709_v33 = vpop.eup %1708 }
 0x733   : > { %v788_v34 = vsub.f32 %v1709_v33, %v2155_v46  ;;  %v1711_v35 = vpop.eup %1710 }
 0x735   : > { %v789_v36 = vmul.f32 %v1711_v35, %v788_v34 }
 0x737   : > { %v790_v38 = vadd.f32 %v789_v36, %v2155_v46 }
 0x739   : > { %v2201_v39 = vmul.f32 %v1344_v37, %v790_v38 }
 0x73b   : > { %v797_v40 = vpack.c.bf16 %v2201_v39, %v2201_v39 }
 0x73d   : > { %831 = vmatmul.mubr.bf16.vlgmr.msra.gmra.mxu0 %v797_v40 }
 0x73e   : > { %907 = vmatpush1.bf16.msra.mxu0 %v1867_v2  ;;  %938 = vmatprep.mubr.bf16.mxu0 %v1811_v3 }
 0x73f   : > { %908 = vmatprep.subr.bf16.mxu0 %v1874_v4 }
 0x742   : > { %909 = vmatpush1.bf16.msra.mxu0 %v1880_v5 }
 0x743   : > { %910 = vmatprep.subr.bf16.mxu0 %v1886_v6 }
 0x746   : > { %911 = vmatpush1.bf16.msra.mxu0 %v1892_v7 }
 0x747   : > { %912 = vmatprep.subr.bf16.mxu0 %v1898_v8 }
 0x74a   : > { %913 = vmatpush1.bf16.msra.mxu0 %v1904_v9 }
 0x74b   : > { %914 = vmatprep.subr.bf16.mxu0 %v1909_v10 }
 0x74e   : > { %915 = vmatpush1.bf16.msra.mxu0 %v1915_v11 }
 0x74f   : > { %916 = vmatprep.subr.bf16.mxu0 %v1920_v12 }
 0x752   : > { %917 = vmatpush1.bf16.msra.mxu0 %v1928_v13 }
 0x753   : > { %918 = vmatprep.subr.bf16.mxu0 %v1934_v14 }
 0x756   : > { %919 = vmatpush1.bf16.msra.mxu0 %v1940_v15 }
 0x757   : > { %920 = vmatprep.subr.bf16.mxu0 %v1947_v18 }
 0x75a   : > { %921 = vmatpush1.bf16.msra.mxu0 %v1955_v20 }
 0x75b   : > { %1014 = vmatprep.subr.bf16.mxu0 %v1862_v1 }
 0x7fd   : > { %v832_v42 = vpop.f32.mrf.mxu0 }
 0x7fe   : > { %v839_v43 = vadd.f32 %v1345_v41, %v832_v42 }
 0x7ff   : > { %v834_v44 = vpop.f32.mrf.mxu0 }
 0x800   : > { %v1348_v45 = vmul.f32 -1.442695, %v839_v43  ;;  %v846_v54 = vadd.f32 %v1346_v53, %v834_v44  ;;  %v1353_v43 = vld [vmem:[%s1857_s21 + $0xb8] sm:$0xff] }
 0x801   : > { %v836_v46 = vpop.f32.mrf.mxu0 }
 0x802   : > { %1712 = vpow2.f32 %v1348_v45  ;;  %v1349_v55 = vmul.f32 -1.442695, %v846_v54  ;;  %v1356_v54 = vld [vmem:[%s1857_s21 + $0xc0] sm:$0xff] }
 0x803   : > { %v837_v47 = vpop.f32.mrf.mxu0 }
 0x80f   : > { %v1713_v48 = vpop.eup %1712 }
 0x810   : > { %v843_v49 = vadd.f32 1.0, %v1713_v48 }
 0x812   : > { %1714 = vrcp.f32 %v843_v49 }
 0x813   : > { %1716 = vpow2.f32 %v1349_v55 }
 0x81f   : > { %v1715_v50 = vpop.eup %1714 }
 0x820   : > { %v853_v51 = vmul.f32 %v1715_v50, %v2201_v39  ;;  %v1717_v56 = vpop.eup %1716 }
 0x821   : > { %v850_v59 = vadd.f32 1.0, %v1717_v56 }
 0x822   : > { %v854_v52 = vpack.c.bf16 %v853_v51, %v853_v51 }
 0x824   : > { %1542 = vmatmul.mubr.bf16.vlgmr.msra.gmra.mxu1 %v854_v52 }
 0x825   : > { %1546 = vmatpush3.bf16.msra.mxu1 %v1982_v22  ;;  %1561 = vmatprep.mubr.msk.bf16.mxu1 %vm1813_vm0, %v1812_v23 }
 0x826   : > { %1547 = vmatprep.subr.bf16.mxu1 %v1812_v23 }
 0x829   : > { %1548 = vmatpush3.bf16.msra.mxu1 %v1990_v24 }
 0x82a   : > { %1549 = vmatprep.subr.bf16.mxu1 %v1812_v23 }
 0x82d   : > { %1550 = vmatpush3.bf16.msra.mxu1 %v1997_v25 }
 0x82e   : > { %1551 = vmatprep.subr.bf16.mxu1 %v1812_v23 }
 0x831   : > { %1552 = vmatpush3.bf16.msra.mxu1 %v2004_v26 }
 0x832   : > { %1553 = vmatprep.subr.bf16.mxu1 %v1812_v23 }
 0x835   : > { %1554 = vmatpush3.bf16.msra.mxu1 %v2011_v27 }
 0x836   : > { %1555 = vmatprep.subr.bf16.mxu1 %v1812_v23 }
 0x839   : > { %1556 = vmatpush3.bf16.msra.mxu1 %v2017_v28 }
 0x83a   : > { %1557 = vmatprep.subr.bf16.mxu1 %v1812_v23 }
 0x83d   : > { %1558 = vmatpush3.bf16.msra.mxu1 %v2026_v29 }
 0x83e   : > { %1559 = vmatprep.subr.bf16.mxu1 %v1812_v23 }
 0x841   : > { %1560 = vmatpush3.bf16.msra.mxu1 %v2033_v30 }
 0x842   : > { %1565 = vmatprep.subr.bf16.mxu1 %v1812_v23 }
 0x8e4   : > { %v889_v58 = vpop.f32.mrf.mxu1 }
 0x8e5   : > { %v890_v60 = vadd.f32 %v1347_v57, %v889_v58  ;;  %v1752_v58 = vld [vmem:[%s2379_s1 + $0x70] ss:$8 sps:$4 sm:$0xff]  }
 0x8e6   : > { %v1543_v61 = vpop.f32.mrf.mxu1 }
 0x8e7   : > { %1718 = vtanh.f32 %v890_v60  ;;  %v1754_v60 = vld [vmem:[%s2379_s1 + $0x60] ss:$8 sps:$4 sm:$0xff]   ;;  %v1755_v61 = vld [vmem:[%s2379_s1 + $0x54] ss:$8 sps:$4 sm:$0xff]  }
 0x8e8   : > { %v892_v62 = vpop.f32.mrf.mxu1  ;;  %1720 = vrcp.f32 %v850_v59  ;;  %v1753_v59 = vld [vmem:[%s2379_s1 + $0x64] ss:$8 sps:$4 sm:$0xff]  }
 0x8e9   : > { %v1757_v62 = vld [vmem:[%s2379_s1 + $0x44] ss:$8 sps:$4 sm:$0xff]  }
 0x8ea   : > { %v1544_v63 = vpop.f32.mrf.mxu1 }
 0x8eb   : > { %v1357_v63 = vld [vmem:[%s1857_s21 + $0xc8] sm:$0xff] }
 0x8f4   : > { %v1719_v0 = vpop.eup %1718 }
 0x8f5   : > { %v896_v16 = vsub.f32 %v1719_v0, %v2201_v39  ;;  %v1721_v17 = vpop.eup %1720 }
 0x8f7   : > { %v897_v19 = vmul.f32 %v1721_v17, %v896_v16 }
 0x8f9   : > { %v898_v31 = vadd.f32 %v897_v19, %v2201_v39 }
 0x8fb   : > { %v2247_v32 = vmul.f32 %v1350_v21, %v898_v31 }
 0x8fd   : > { %v905_v33 = vpack.c.bf16 %v2247_v32, %v2247_v32 }
 0x8ff   : > { %939 = vmatmul.mubr.bf16.vlgmr.msra.gmra.mxu0 %v905_v33 }
 0x900   : > { %1015 = vmatpush1.bf16.msra.mxu0 %v1867_v2  ;;  %1046 = vmatprep.mubr.bf16.mxu0 %v1811_v3  ;;  %v1351_v2 = vld [vmem:[%s1857_s21 + $0xa8] sm:$0xff] }
 0x901   : > { %1016 = vmatprep.subr.bf16.mxu0 %v1874_v4 }
 0x904   : > { %1017 = vmatpush1.bf16.msra.mxu0 %v1880_v5 }
 0x905   : > { %1018 = vmatprep.subr.bf16.mxu0 %v1886_v6 }
 0x908   : > { %1019 = vmatpush1.bf16.msra.mxu0 %v1892_v7 }
 0x909   : > { %1020 = vmatprep.subr.bf16.mxu0 %v1898_v8 }
 0x90c   : > { %1021 = vmatpush1.bf16.msra.mxu0 %v1904_v9 }
 0x90d   : > { %1022 = vmatprep.subr.bf16.mxu0 %v1909_v10 }
 0x910   : > { %1023 = vmatpush1.bf16.msra.mxu0 %v1915_v11 }
 0x911   : > { %1024 = vmatprep.subr.bf16.mxu0 %v1920_v12 }
 0x914   : > { %1025 = vmatpush1.bf16.msra.mxu0 %v1928_v13 }
 0x915   : > { %1026 = vmatprep.subr.bf16.mxu0 %v1934_v14 }
 0x918   : > { %1027 = vmatpush1.bf16.msra.mxu0 %v1940_v15 }
 0x919   : > { %1028 = vmatprep.subr.bf16.mxu0 %v1947_v18 }
 0x91c   : > { %1029 = vmatpush1.bf16.msra.mxu0 %v1955_v20 }
 0x91d   : > { %1122 = vmatprep.subr.bf16.mxu0 %v1862_v1  ;;  %v1352_v1 = vld [vmem:[%s1857_s21 + $0xb0] sm:$0xff] }
 0x9bf   : > { %v940_v4 = vpop.f32.mrf.mxu0 }
 0x9c0   : > { %v947_v5 = vadd.f32 %v1351_v2, %v940_v4  ;;  %v1362_v2 = vld [vmem:[%s1857_s21 + $0xe0] sm:$0xff] }
 0x9c1   : > { %v942_v6 = vpop.f32.mrf.mxu0 }
 0x9c2   : > { %v1354_v7 = vmul.f32 -1.442695, %v947_v5  ;;  %v954_v40 = vadd.f32 %v1352_v1, %v942_v6 }
 0x9c3   : > { %v944_v8 = vpop.f32.mrf.mxu0 }
 0x9c4   : > { %1722 = vpow2.f32 %v1354_v7  ;;  %v1355_v41 = vmul.f32 -1.442695, %v954_v40  ;;  %v1363_v7 = vld [vmem:[%s1857_s21 + $0xe8] sm:$0xff] }
 0x9c5   : > { %v945_v34 = vpop.f32.mrf.mxu0 }
 0x9d1   : > { %v1723_v35 = vpop.eup %1722 }
 0x9d2   : > { %v951_v36 = vadd.f32 1.0, %v1723_v35 }
 0x9d4   : > { %1724 = vrcp.f32 %v951_v36 }
 0x9d5   : > { %1726 = vpow2.f32 %v1355_v41 }
 0x9e1   : > { %v1725_v37 = vpop.eup %1724 }
 0x9e2   : > { %v961_v38 = vmul.f32 %v1725_v37, %v2247_v32  ;;  %v1727_v42 = vpop.eup %1726 }
 0x9e3   : > { %v958_v45 = vadd.f32 1.0, %v1727_v42 }
 0x9e4   : > { %v962_v39 = vpack.c.bf16 %v961_v38, %v961_v38 }
 0x9e6   : > { %1562 = vmatmul.mubr.bf16.vlgmr.msra.gmra.mxu1 %v962_v39 }
 0x9e7   : > { %1566 = vmatpush3.bf16.msra.mxu1 %v1982_v22  ;;  %1581 = vmatprep.mubr.msk.bf16.mxu1 %vm1813_vm0, %v1812_v23 }
 0x9e8   : > { %1567 = vmatprep.subr.bf16.mxu1 %v1812_v23 }
 0x9eb   : > { %1568 = vmatpush3.bf16.msra.mxu1 %v1990_v24 }
 0x9ec   : > { %1569 = vmatprep.subr.bf16.mxu1 %v1812_v23 }
 0x9ef   : > { %1570 = vmatpush3.bf16.msra.mxu1 %v1997_v25 }
 0x9f0   : > { %1571 = vmatprep.subr.bf16.mxu1 %v1812_v23 }
 0x9f3   : > { %1572 = vmatpush3.bf16.msra.mxu1 %v2004_v26 }
 0x9f4   : > { %1573 = vmatprep.subr.bf16.mxu1 %v1812_v23 }
 0x9f7   : > { %1574 = vmatpush3.bf16.msra.mxu1 %v2011_v27 }
 0x9f8   : > { %1575 = vmatprep.subr.bf16.mxu1 %v1812_v23 }
 0x9fb   : > { %1576 = vmatpush3.bf16.msra.mxu1 %v2017_v28 }
 0x9fc   : > { %1577 = vmatprep.subr.bf16.mxu1 %v1812_v23 }
 0x9ff   : > { %1578 = vmatpush3.bf16.msra.mxu1 %v2026_v29 }
 0xa00   : > { %1579 = vmatprep.subr.bf16.mxu1 %v1812_v23 }
 0xa03   : > { %1580 = vmatpush3.bf16.msra.mxu1 %v2033_v30 }
 0xa04   : > { %1585 = vmatprep.subr.bf16.mxu1 %v1812_v23 }
 0xaa6   : > { %v997_v44 = vpop.f32.mrf.mxu1 }
 0xaa7   : > { %v998_v46 = vadd.f32 %v1353_v43, %v997_v44  ;;  %v1364_v43 = vld [vmem:[%s1857_s21 + $0xf0] sm:$0xff] }
 0xaa8   : > { %v1563_v47 = vpop.f32.mrf.mxu1 }
 0xaa9   : > { %1728 = vtanh.f32 %v998_v46  ;;  %v1365_v47 = vld [vmem:[%s1857_s21 + $0xf8] sm:$0xff] }
 0xaaa   : > { %v1000_v48 = vpop.f32.mrf.mxu1  ;;  %1730 = vrcp.f32 %v958_v45 }
 0xaac   : > { %v1564_v49 = vpop.f32.mrf.mxu1 }
 0xab6   : > { %v1729_v50 = vpop.eup %1728 }
 0xab7   : > { %v1004_v51 = vsub.f32 %v1729_v50, %v2247_v32  ;;  %v1731_v52 = vpop.eup %1730 }
 0xab9   : > { %v1005_v53 = vmul.f32 %v1731_v52, %v1004_v51 }
 0xabb   : > { %v1006_v55 = vadd.f32 %v1005_v53, %v2247_v32 }
 0xabd   : > { %v2293_v56 = vmul.f32 %v1356_v54, %v1006_v55 }
 0xabf   : > { %v1013_v57 = vpack.c.bf16 %v2293_v56, %v2293_v56 }
 0xac1   : > { %1047 = vmatmul.mubr.bf16.vlgmr.msra.gmra.mxu0 %v1013_v57 }
 0xac2   : > { %1123 = vmatpush1.bf16.msra.mxu0 %v1752_v58  ;;  %1154 = vmatprep.mubr.bf16.mxu0 %v1811_v3  ;;  %v1756_v3 = vld [vmem:[%s2379_s1 + $0x50] ss:$8 sps:$4 sm:$0xff]  }
 0xac3   : > { %1124 = vmatprep.subr.bf16.mxu0 %v1753_v59 }
 0xac6   : > { %1125 = vmatpush1.bf16.msra.mxu0 %v1754_v60 }
 0xac7   : > { %1126 = vmatprep.subr.bf16.mxu0 %v1755_v61 }
 0xaca   : > { %1127 = vmatpush1.bf16.msra.mxu0 %v1756_v3 }
 0xacb   : > { %1128 = vmatprep.subr.bf16.mxu0 %v1757_v62 }
 0xace   : > { %1129 = vmatpush1.bf16.msra.mxu0 %v1904_v9 }
 0xacf   : > { %1130 = vmatprep.subr.bf16.mxu0 %v1909_v10 }
 0xad2   : > { %1131 = vmatpush1.bf16.msra.mxu0 %v1915_v11 }
 0xad3   : > { %1132 = vmatprep.subr.bf16.mxu0 %v1920_v12 }
 0xad6   : > { %1133 = vmatpush1.bf16.msra.mxu0 %v1928_v13 }
 0xad7   : > { %1134 = vmatprep.subr.bf16.mxu0 %v1934_v14 }
 0xada   : > { %1135 = vmatpush1.bf16.msra.mxu0 %v1940_v15  ;;  %v1358_v15 = vld [vmem:[%s1857_s21 + $0xd0] sm:$0xff] }
 0xadb   : > { %1136 = vmatprep.subr.bf16.mxu0 %v1947_v18 }
 0xade   : > { %1137 = vmatpush1.bf16.msra.mxu0 %v1955_v20 }
 0xb81   : > { %v1048_v0 = vpop.f32.mrf.mxu0 }
 0xb82   : > { %v1055_v16 = vadd.f32 %v1357_v63, %v1048_v0 }
 0xb83   : > { %v1050_v9 = vpop.f32.mrf.mxu0 }
 0xb84   : > { %v1360_v17 = vmul.f32 -1.442695, %v1055_v16  ;;  %v1062_v18 = vadd.f32 %v1358_v15, %v1050_v9 }
 0xb85   : > { %v1052_v10 = vpop.f32.mrf.mxu0 }
 0xb86   : > { %1732 = vpow2.f32 %v1360_v17  ;;  %v1361_v20 = vmul.f32 -1.442695, %v1062_v18 }
 0xb87   : > { %v1053_v11 = vpop.f32.mrf.mxu0 }
 0xb93   : > { %v1733_v19 = vpop.eup %1732 }
 0xb94   : > { %v1059_v12 = vadd.f32 1.0, %v1733_v19 }
 0xb96   : > { %1734 = vrcp.f32 %v1059_v12 }
 0xb97   : > { %1736 = vpow2.f32 %v1361_v20 }
 0xba3   : > { %v1735_v13 = vpop.eup %1734 }
 0xba4   : > { %v1069_v14 = vmul.f32 %v1735_v13, %v2293_v56 }
 0xba6   : > { %v1070_v21 = vpack.c.bf16 %v1069_v14, %v1069_v14 }
 0xba8   : > { %1582 = vmatmul.mubr.bf16.vlgmr.msra.gmra.mxu1 %v1070_v21 }
 0xba9   : > { %1586 = vmatpush3.bf16.msra.mxu1 %v1982_v22  ;;  %1601 = vmatprep.mubr.msk.bf16.mxu1 %vm1813_vm0, %v1812_v23  ;;  %v1737_v22 = vpop.eup %1736 }
 0xbaa   : > { %1587 = vmatprep.subr.bf16.mxu1 %v1812_v23 }
 0xbad   : > { %1588 = vmatpush3.bf16.msra.mxu1 %v1990_v24  ;;  %v1359_v24 = vld [vmem:[%s1857_s21 + $0xd8] sm:$0xff]  ;;  %s1758_s21 = scalar_lea.vmem %s1234_s12, 128 }
 0xbae   : > { %1589 = vmatprep.subr.bf16.mxu1 %v1812_v23  ;;  %p1759_p7 = scmp.ne.s32.totalorder %s1234_s12, %s1758_s21  ;;  %p1766_p11 = scmp.lt.s32.totalorder %s1758_s21, %s1758_s21 }
 0xbb0   : > { %p1760_p8 = pnand %p1759_p7, %p2354_p6  ;;  %p1767_p12 = por %p1766_p11, %p1765_p10 }
 0xbb1   : > { %1590 = vmatpush3.bf16.msra.mxu1 %v1997_v25 }
 0xbb2   : > { %1591 = vmatprep.subr.bf16.mxu1 %v1812_v23  ;;  %p1761_p9 = pneg %p1760_p8 }
 0xbb4   : > { %p1768_p13 = pnand %p1767_p12, %p1761_p9 }
 0xbb5   : > { %1592 = vmatpush3.bf16.msra.mxu1 %v2004_v26  ;;  %v1066_v26 = vadd.f32 1.0, %v1737_v22 }
 0xbb6   : > { %1593 = vmatprep.subr.bf16.mxu1 %v1812_v23 }
 0xbb9   : > { %1594 = vmatpush3.bf16.msra.mxu1 %v2011_v27 }
 0xbba   : > { %1595 = vmatprep.subr.bf16.mxu1 %v1812_v23 }
 0xbbd   : > { %1596 = vmatpush3.bf16.msra.mxu1 %v2017_v28 }
 0xbbe   : > { %1597 = vmatprep.subr.bf16.mxu1 %v1812_v23 }
 0xbc1   : > { %1598 = vmatpush3.bf16.msra.mxu1 %v2026_v29 }
 0xbc2   : > { %1599 = vmatprep.subr.bf16.mxu1 %v1812_v23 }
 0xbc5   : > { %1600 = vmatpush3.bf16.msra.mxu1 %v2033_v30 }
 0xc68   : > { %v1105_v25 = vpop.f32.mrf.mxu1 }
 0xc69   : > { %v1106_v27 = vadd.f32 %v1359_v24, %v1105_v25 }
 0xc6a   : > { %v1583_v28 = vpop.f32.mrf.mxu1 }
 0xc6b   : > { %1738 = vtanh.f32 %v1106_v27 }
 0xc6c   : > { %v1108_v31 = vpop.f32.mrf.mxu1  ;;  %1740 = vrcp.f32 %v1066_v26 }
 0xc6e   : > { %v1584_v29 = vpop.f32.mrf.mxu1 }
 0xc78   : > { %v1739_v32 = vpop.eup %1738 }
 0xc79   : > { %v1112_v23 = vsub.f32 %v1739_v32, %v2293_v56  ;;  %v1741_v30 = vpop.eup %1740 }
 0xc7b   : > { %v1113_v33 = vmul.f32 %v1741_v30, %v1112_v23 }
 0xc7d   : > { %v1114_v4 = vadd.f32 %v1113_v33, %v2293_v56 }
 0xc7f   : > { %v1120_v5 = vmul.f32 %v1362_v2, %v1114_v4 }
 0xc81   : > { %v1121_v6 = vpack.c.bf16 %v1120_v5, %v1120_v5 }
 0xc83   : > { %1155 = vmatmul.mubr.bf16.vlgmr.msra.gmra.mxu0 %v1121_v6 }
 0xd43   : > { %v1156_v8 = vpop.f32.mrf.mxu0 }
 0xd44   : > { %v1163_v34 = vadd.f32 %v1363_v7, %v1156_v8 }
 0xd45   : > { %v1158_v35 = vpop.f32.mrf.mxu0 }
 0xd46   : > { %v1366_v36 = vmul.f32 -1.442695, %v1163_v34  ;;  %v1170_v44 = vadd.f32 %v1364_v43, %v1158_v35 }
 0xd47   : > { %v1160_v37 = vpop.f32.mrf.mxu0 }
 0xd48   : > { %1742 = vpow2.f32 %v1366_v36  ;;  %v1367_v45 = vmul.f32 -1.442695, %v1170_v44 }
 0xd49   : > { %v1161_v38 = vpop.f32.mrf.mxu0 }
 0xd55   : > { %v1743_v39 = vpop.eup %1742 }
 0xd56   : > { %v1167_v1 = vadd.f32 1.0, %v1743_v39 }
 0xd58   : > { %1744 = vrcp.f32 %v1167_v1 }
 0xd59   : > { %1746 = vpow2.f32 %v1367_v45 }
 0xd65   : > { %v1745_v40 = vpop.eup %1744 }
 0xd66   : > { %v1177_v41 = vmul.f32 %v1745_v40, %v1120_v5  ;;  %v1747_v46 = vpop.eup %1746 }
 0xd67   : > { %v1174_v49 = vadd.f32 1.0, %v1747_v46 }
 0xd68   : > { %v1178_v42 = vpack.c.bf16 %v1177_v41, %v1177_v41 }
 0xd6a   : > { %1602 = vmatmul.mubr.bf16.vlgmr.msra.gmra.mxu1 %v1178_v42 }
 0xe2a   : > { %v1213_v48 = vpop.f32.mrf.mxu1 }
 0xe2b   : > { %v1214_v50 = vadd.f32 %v1365_v47, %v1213_v48 }
 0xe2c   : > { %v1603_v51 = vpop.f32.mrf.mxu1 }
 0xe2d   : > { %1748 = vtanh.f32 %v1214_v50 }
 0xe2e   : > { %v1216_v52 = vpop.f32.mrf.mxu1  ;;  %1750 = vrcp.f32 %v1174_v49 }
 0xe30   : > { %v1604_v53 = vpop.f32.mrf.mxu1 }
 0xe3a   : > { %v1749_v54 = vpop.eup %1748 }
 0xe3b   : > { %v1220_v55 = vsub.f32 %v1749_v54, %v1120_v5  ;;  %v1751_v56 = vpop.eup %1750 }
 0xe3d   : > { %v1221_v57 = vmul.f32 %v1751_v56, %v1220_v55 }
 0xe3f   : > { %v1222_v58 = vadd.f32 %v1221_v57, %v1120_v5 }
 0xe41   : > { %1223 = vst [vmem:[#allocation2] sm:$0xff] %v1222_v58 }
 0xe42   : > { %1771 = shalt.err (!%p1768_p13)
}
 0xe43   : > { %1606 = dma.vmem_to_hbm [thread:$0]  (%p2354_p6), %s1234_s12, 128, %s2381_s3, [#allocation3]  }
 0xe44   : > { %1795 = dma.done.wait (%p2354_p6), [#allocation3], 128  }
 0xe45   : > { %1797 = vsyncadd (%p2354_p6), [#allocation3], 4294967168 }
 0xe46 PF: > { %s14_s14 = sadd.s32 1, %s1808_s14   ;;  %s2383_s12 = smov %s1804_s13 }
 0xe47   : > { %p11_p0 = scmp.ge.s32.totalorder %s14_s14, 4   ;;  %s2384_s13 = smov %s2386_s16 }
 0xe49   :  { %13 = sbr.rel (!%p11_p0) target bundleno = 2 (0x2), region = 71 }
 0xe4e   :  { %1246 = vsyncpa [#allocation3], 1 }
 0xe4f   :  { %1248 = vsyncpa [#allocation3 + $0x1], 1 }

</bundles_post_ra>
